<compile_context>
chip_gen: v6e
topology: v6e:2x2x1
jax: 0.10.0
libtpu: 0.0.40
codegen_flags: <defaults>
</compile_context>

<pallas_src>
import jax
import jax.numpy as jnp
from jax import lax
from jax.experimental import pallas as pl
from jax.experimental.pallas import tpu as pltpu

EPS = 1e-5
NEG_SLOPE = 0.1
_LP = 16  # aligned start column of the padded-scratch interior (bf16 sublane tile = 16)


def _lrelu(v):
    return jnp.where(v > 0, v, NEG_SLOPE * v)


def _bn_affine(g, b, m, v):
    s = g / jnp.sqrt(v + EPS)
    return s, b - m * s


def _space_to_depth(x, s):
    """(N, H, W, C) -> (N, H//s, W//s, s*s*C); channel order is (p, q, c), c minor."""
    if s == 1:
        return x
    N, H, W, C = x.shape
    x = x.reshape(N, H // s, s, W // s, s, C)
    x = x.transpose(0, 1, 3, 2, 4, 5)
    return x.reshape(N, H // s, W // s, s * s * C)


def _conv1_s2d_weights(w1, stride):
    """Re-express the 3x3 / pad-1 / stride-s conv as a Kt x Kt conv over the s2d input.

    Returns (Kt, (pad_t, pad_b, pad_l, pad_r), w1t) with w1t of shape
    (Kt*Kt, stride*stride*Cin, Cout), tap-major, s2d-channel order (p, q, c).
    For stride == 1 this degenerates to w1.reshape(9, Cin, Cout) with pads (1, 1, 1, 1).
    """
    Kh, Kw, Cin, Cout = w1.shape                       # HWIO
    s = stride
    offs = [(d - 1) // s for d in range(Kh)]           # s2d row offsets touched by the taps
    umin, umax = min(offs), max(offs)                  # umin == -1 always
    Kt = umax - umin + 1
    pad_lo, pad_hi = -umin, umax
    w1t = jnp.zeros((Kt, Kt, s, s, Cin, Cout), w1.dtype)
    for dh in range(Kh):
        kh, p = (dh - 1) // s - umin, (dh - 1) % s
        for dw in range(Kw):
            kw, q = (dw - 1) // s - umin, (dw - 1) % s
            w1t = w1t.at[kh, kw, p, q].set(w1[dh, dw])
    return Kt, (pad_lo, pad_hi, pad_lo, pad_hi), w1t.reshape(Kt * Kt, s * s * Cin, Cout)


def _choose_batch_block(n, hw, target_m=256):
    """Largest divisor NB of n with NB*hw <= ~target_m, preferring an even grid length."""
    cap = max(1, target_m // hw)
    divs = [d for d in range(1, n + 1) if n % d == 0 and d <= cap]
    even = [d for d in divs if (n // d) % 2 == 0]
    return max(even) if even else max(divs)


def _default_vmem_limit_bytes():
    try:
        kind = jax.devices()[0].device_kind.lower()
    except Exception:
        kind = ""
    if ("v5" in kind) or ("v6" in kind):
        return 64 * 1024 * 1024       # v5e/v6e: 128 MiB physical VMEM
    return 32 * 1024 * 1024           # v7x (64 MiB physical) and unknown parts


def _make_fused_kernel(NB, Ho, Wo, Cin, Cout, Cs, Kt1, pads1, has_id_conv,
                       activate_before_residual, mxu_dtype):
    pad_t, pad_b, pad_l, pad_r = pads1
    HW = Ho * Wo
    Hp1 = Ho + pad_t + pad_b
    Wp1 = _LP + Wo + pad_r           # columns [0, _LP - pad_l) are never read
    Hp2 = Ho + 2
    Wp2 = _LP + Wo + 1
    taps1 = [(kh, kw) for kh in range(Kt1) for kw in range(Kt1)]
    taps2 = [(dh, dw) for dh in range(3) for dw in range(3)]

    def kernel(x_ref, w1_ref, w2_ref, s1_ref, b1_ref, s2_ref, b2_ref,
               o_ref, apad_ref, hpad_ref, im1_ref, im2_ref):
        # ---- BN1 (frozen affine) + LeakyReLU on the s2d input block (f32 math) --------
        x = x_ref[...]                                            # (NB, Ho, Wo, Cs) f32
        a = _lrelu(x * s1_ref[...] + b1_ref[...])
        a_mx = a.astype(mxu_dtype)

        # ---- conv1: padded (mxu_dtype) scratch; only halo strips are re-zeroed --------
        if pad_t:
            apad_ref[:, 0:pad_t, :, :] = jnp.zeros((NB, pad_t, Wp1, Cs), mxu_dtype)
        if pad_b:
            apad_ref[:, pad_t + Ho:Hp1, :, :] = jnp.zeros((NB, pad_b, Wp1, Cs), mxu_dtype)
        if pad_l:
            apad_ref[:, :, _LP - pad_l:_LP, :] = jnp.zeros((NB, Hp1, pad_l, Cs), mxu_dtype)
        if pad_r:
            apad_ref[:, :, _LP + Wo:Wp1, :] = jnp.zeros((NB, Hp1, pad_r, Cs), mxu_dtype)
        apad_ref[:, pad_t:pad_t + Ho, _LP:_LP + Wo, :] = a_mx     # aligned interior store

        # im2col: every window is copied exactly once into the contiguous LHS buffer; a
        # single big-K matmul then accumulates all taps inside the MXU (no acc RMW).
        for b in range(NB):
            r0 = b * HW
            for t, (kh, kw) in enumerate(taps1):
                c0 = _LP - pad_l + kw
                win = apad_ref[b, kh:kh + Ho, c0:c0 + Wo, :]
                im1_ref[r0:r0 + HW, t * Cs:(t + 1) * Cs] = win.reshape(HW, Cs)
        acc = jnp.dot(im1_ref[...], w1_ref[...],
                      preferred_element_type=jnp.float32)          # (NB*HW, Cout)

        # ---- BN2 + LeakyReLU (f32) -----------------------------------------------------
        h = _lrelu(acc * s2_ref[...] + b2_ref[...])
        h_mx = h.astype(mxu_dtype)

        # ---- conv2 (3x3, stride 1, pad 1) + shortcut folded along K ---------------------
        hpad_ref[:, 0:1, :, :] = jnp.zeros((NB, 1, Wp2, Cout), mxu_dtype)
        hpad_ref[:, Ho + 1:Hp2, :, :] = jnp.zeros((NB, 1, Wp2, Cout), mxu_dtype)
        hpad_ref[:, :, _LP - 1:_LP, :] = jnp.zeros((NB, Hp2, 1, Cout), mxu_dtype)
        hpad_ref[:, :, _LP + Wo:Wp2, :] = jnp.zeros((NB, Hp2, 1, Cout), mxu_dtype)

        xs = a if activate_before_residual else x                  # f32 shortcut source
        for b in range(NB):
            r0 = b * HW
            hpad_ref[b, 1:Ho + 1, _LP:_LP + Wo, :] = (
                h_mx[r0:r0 + HW, :].reshape(Ho, Wo, Cout))
        for b in range(NB):
            r0 = b * HW
            for t, (dh, dw) in enumerate(taps2):
                c0 = _LP - 1 + dw
                win = hpad_ref[b, dh:dh + Ho, c0:c0 + Wo, :]
                im2_ref[r0:r0 + HW, t * Cout:(t + 1) * Cout] = win.reshape(HW, Cout)
            if has_id_conv:
                # s2d channel block 0 (sub-pixel (0,0)) is exactly x[::stride, ::stride, :];
                # the 1x1 shortcut conv rides along as extra K columns of the conv2 matmul.
                xs_b = xs[b, :, :, :Cin].reshape(HW, Cin).astype(mxu_dtype)
                im2_ref[r0:r0 + HW, 9 * Cout:9 * Cout + Cin] = xs_b
        out = jnp.dot(im2_ref[...], w2_ref[...],
                      preferred_element_type=jnp.float32)          # (NB*HW, Cout)

        if has_id_conv:
            o_ref[...] = out.astype(o_ref.dtype)
        else:
            # identity shortcut (stride 1, Cin == Cout): plain f32 add, no MXU round trip
            for b in range(NB):
                r0 = b * HW
                o_ref[r0:r0 + HW, :] = (out[r0:r0 + HW, :]
                                        + xs[b].reshape(HW, Cout)).astype(o_ref.dtype)

    return kernel


def residual_forward(x_nchw, params, *, stride=1, activate_before_residual=False,
                     mxu_dtype=jnp.bfloat16, out_dtype=jnp.float32,
                     vmem_limit_bytes=None):
    """Forward pass of wrn.residual.  Input/Output are NCHW (output dtype = out_dtype).

    mxu_dtype: dtype of the MXU matmul operands (weights, conv windows, shortcut pixels).
    BatchNorm, LeakyReLU, accumulation and the identity shortcut stay in float32.
    """
    x = jnp.transpose(x_nchw, (0, 2, 3, 1)).astype(jnp.float32)     # NCHW -> NHWC
    N, H, W, Cin = x.shape
    Cout = params["w1"].shape[-1]
    assert H % stride == 0 and W % stride == 0, "spatial dims must be divisible by stride"
    Ho, Wo = H // stride, W // stride
    HW = Ho * Wo
    Cs = stride * stride * Cin
    has_id_conv = (stride >= 2) or (Cin != Cout)

    # frozen-BN affine params
    s1, b1 = _bn_affine(params["bn1_gamma"], params["bn1_beta"],
                        params["bn1_mean"], params["bn1_var"])
    s2, b2 = _bn_affine(params["bn2_gamma"], params["bn2_beta"],
                        params["bn2_mean"], params["bn2_var"])
    s1t = jnp.tile(s1, stride * stride).reshape(1, Cs)
    b1t = jnp.tile(b1, stride * stride).reshape(1, Cs)
    s2 = s2.reshape(1, Cout)
    b2 = b2.reshape(1, Cout)

    # conv weights pre-arranged on the host (tap-major, im2col / matmul ready)
    Kt1, pads1, w1t = _conv1_s2d_weights(params["w1"], stride)
    KK1 = Kt1 * Kt1
    w1_2d = w1t.reshape(KK1 * Cs, Cout).astype(mxu_dtype)
    w2_rows = params["w2"].reshape(9 * Cout, Cout)
    if has_id_conv:
        # fold the 1x1 (strided) shortcut conv into the conv2 matmul as extra K rows
        w2_rows = jnp.concatenate([w2_rows, params["wid"]], axis=0)
    w2_2d = w2_rows.astype(mxu_dtype)
    K2 = w2_2d.shape[0]
    pad_t, pad_b, pad_l, pad_r = pads1

    # space-to-depth of the input: pure data movement; folds the stride into channels and
    # makes the strided shortcut input the first Cin channels of every s2d pixel.
    x_s2d = _space_to_depth(x, stride)

    NB = _choose_batch_block(N, HW)
    grid = (N // NB,)

    kernel = _make_fused_kernel(NB, Ho, Wo, Cin, Cout, Cs, Kt1, pads1, has_id_conv,
                                activate_before_residual, mxu_dtype)

    scratch_shapes = [
        pltpu.VMEM((NB, Ho + pad_t + pad_b, _LP + Wo + pad_r, Cs), mxu_dtype),  # padded s2d act
        pltpu.VMEM((NB, Ho + 2, _LP + Wo + 1, Cout), mxu_dtype),                # padded conv1 out
        pltpu.VMEM((NB * HW, KK1 * Cs), mxu_dtype),                             # conv1 im2col LHS
        pltpu.VMEM((NB * HW, K2), mxu_dtype),                                   # conv2 im2col LHS
    ]

    in_specs = [
        pl.BlockSpec((NB, Ho, Wo, Cs), lambda n: (n, 0, 0, 0)),
        pl.BlockSpec((KK1 * Cs, Cout), lambda n: (0, 0)),
        pl.BlockSpec((K2, Cout), lambda n: (0, 0)),
        pl.BlockSpec((1, Cs), lambda n: (0, 0)),
        pl.BlockSpec((1, Cs), lambda n: (0, 0)),
        pl.BlockSpec((1, Cout), lambda n: (0, 0)),
        pl.BlockSpec((1, Cout), lambda n: (0, 0)),
    ]

    if vmem_limit_bytes is None:
        vmem_limit_bytes = _default_vmem_limit_bytes()

    out2d = pl.pallas_call(
        kernel,
        out_shape=jax.ShapeDtypeStruct((N * HW, Cout), out_dtype),
        grid_spec=pltpu.PrefetchScalarGridSpec(
            num_scalar_prefetch=0,
            grid=grid,
            in_specs=in_specs,
            out_specs=pl.BlockSpec((NB * HW, Cout), lambda n: (n, 0)),
            scratch_shapes=scratch_shapes,
        ),
        compiler_params=pltpu.CompilerParams(
            dimension_semantics=("parallel",),          # batch-block axis; megacore-shardable
            vmem_limit_bytes=vmem_limit_bytes,
        ),
    )(x_s2d, w1_2d, w2_2d, s1t, b1t, s2, b2)

    out = out2d.reshape(N, Ho, Wo, Cout)
    return jnp.transpose(out, (0, 3, 1, 2))             # NHWC -> NCHW


def init_params(key, in_c, out_c, has_id_conv):
    ks = jax.random.split(key, 11)
    p = {
        "w1": jax.random.normal(ks[0], (3, 3, in_c, out_c), jnp.float32) * 0.2,   # HWIO
        "w2": jax.random.normal(ks[1], (3, 3, out_c, out_c), jnp.float32) * 0.2,  # HWIO
        "bn1_gamma": 1.0 + 0.1 * jax.random.normal(ks[2], (in_c,), jnp.float32),
        "bn1_beta": 0.1 * jax.random.normal(ks[3], (in_c,), jnp.float32),
        "bn1_mean": 0.1 * jax.random.normal(ks[4], (in_c,), jnp.float32),
        "bn1_var": jax.random.uniform(ks[5], (in_c,), jnp.float32, 0.5, 1.5),
        "bn2_gamma": 1.0 + 0.1 * jax.random.normal(ks[6], (out_c,), jnp.float32),
        "bn2_beta": 0.1 * jax.random.normal(ks[7], (out_c,), jnp.float32),
        "bn2_mean": 0.1 * jax.random.normal(ks[8], (out_c,), jnp.float32),
        "bn2_var": jax.random.uniform(ks[9], (out_c,), jnp.float32, 0.5, 1.5),
    }
    if has_id_conv:
        p["wid"] = jax.random.normal(ks[10], (in_c, out_c), jnp.float32) * 0.2    # 1x1 conv
    return p


def residual_reference(x_nchw, params, *, stride=1, activate_before_residual=False):
    """Pure-JAX (XLA conv) reference for numerical validation."""
    x = jnp.transpose(x_nchw, (0, 2, 3, 1)).astype(jnp.float32)
    Cin = x.shape[-1]
    Cout = params["w1"].shape[-1]
    has_id_conv = (stride >= 2) or (Cin != Cout)

    def bn(v, g, b, m, var):
        return (v - m) / jnp.sqrt(var + EPS) * g + b

    a = _lrelu(bn(x, params["bn1_gamma"], params["bn1_beta"],
                  params["bn1_mean"], params["bn1_var"]))
    id_in = a if activate_before_residual else x

    dn = ("NHWC", "HWIO", "NHWC")
    y = lax.conv_general_dilated(a, params["w1"], (stride, stride),
                                 ((1, 1), (1, 1)), dimension_numbers=dn)
    y = _lrelu(bn(y, params["bn2_gamma"], params["bn2_beta"],
                  params["bn2_mean"], params["bn2_var"]))
    y = lax.conv_general_dilated(y, params["w2"], (1, 1),
                                 ((1, 1), (1, 1)), dimension_numbers=dn)
    if has_id_conv:
        ident = lax.conv_general_dilated(id_in,
                                         params["wid"].reshape(1, 1, Cin, Cout),
                                         (stride, stride), ((0, 0), (0, 0)),
                                         dimension_numbers=dn)
    else:
        ident = id_in
    return jnp.transpose(y + ident, (0, 3, 1, 2))


if __name__ == "__main__":
    key = jax.random.PRNGKey(0)
    k_x, k_p, k_x2, k_p2 = jax.random.split(key, 4)

    # --- config 1: downsampling block residual(4, 8, stride=2) (1x1 strided shortcut conv)
    N, Cin, Cout, H, W, stride = 2, 4, 8, 16, 16, 2
    x = jax.random.normal(k_x, (N, Cin, H, W), jnp.float32)          # NCHW
    params = init_params(k_p, Cin, Cout, has_id_conv=True)
    ref = residual_reference(x, params, stride=stride, activate_before_residual=False)

    # strict correctness check: f32 MXU operands
    out = residual_forward(x, params, stride=stride, activate_before_residual=False,
                           mxu_dtype=jnp.float32)
    out = jax.block_until_ready(out)
    assert out.shape == (N, Cout, H // stride, W // stride), out.shape
    if not bool(jnp.allclose(out, ref, rtol=2e-2, atol=2e-2)):
        err = float(jnp.max(jnp.abs(out - ref)))
        raise AssertionError(f"f32 path mismatch vs reference, max abs err = {err}")

    # bf16 MXU operands (f32 accumulation / BN math) -- loose tolerance; f32 check is strict
    out_bf16 = residual_forward(x, params, stride=stride, activate_before_residual=False,
                                mxu_dtype=jnp.bfloat16)
    out_bf16 = jax.block_until_ready(out_bf16)
    if not bool(jnp.allclose(out_bf16, ref, rtol=1e-1, atol=1e-1)):
        err = float(jnp.max(jnp.abs(out_bf16 - ref)))
        raise AssertionError(f"bf16 path mismatch vs reference, max abs err = {err}")

    # --- config 2: stride-1 block with identity shortcut and activate_before_residual=True
    N2, C2, H2, W2 = 2, 8, 8, 8
    x2 = jax.random.normal(k_x2, (N2, C2, H2, W2), jnp.float32)
    params2 = init_params(k_p2, C2, C2, has_id_conv=False)
    ref2 = residual_reference(x2, params2, stride=1, activate_before_residual=True)
    out2 = residual_forward(x2, params2, stride=1, activate_before_residual=True,
                            mxu_dtype=jnp.float32)
    out2 = jax.block_until_ready(out2)
    if not bool(jnp.allclose(out2, ref2, rtol=2e-2, atol=2e-2)):
        err = float(jnp.max(jnp.abs(out2 - ref2)))
        raise AssertionError(f"stride-1 path mismatch vs reference, max abs err = {err}")

    print("KERNEL_OK")
</pallas_src>

<mosaic_0001>
module attributes {stable_mosaic.version = 11 : i64} {
  func.func @kernel(%arg0: i32, %arg1: memref<1x8x8x16xf32, #tpu.memory_space<vmem>>, %arg2: memref<64x8xf32, #tpu.memory_space<vmem>>, %arg3: memref<76x8xf32, #tpu.memory_space<vmem>>, %arg4: memref<1x16xf32, #tpu.memory_space<vmem>>, %arg5: memref<1x16xf32, #tpu.memory_space<vmem>>, %arg6: memref<1x8xf32, #tpu.memory_space<vmem>>, %arg7: memref<1x8xf32, #tpu.memory_space<vmem>>, %arg8: memref<64x8xf32, #tpu.memory_space<vmem>>, %arg9: memref<1x9x24x16xf32, #tpu.memory_space<vmem>>, %arg10: memref<1x10x25x8xf32, #tpu.memory_space<vmem>>, %arg11: memref<64x64xf32, #tpu.memory_space<vmem>>, %arg12: memref<64x76xf32, #tpu.memory_space<vmem>>) attributes {dimension_semantics = [#tpu.dimension_semantics<parallel>], iteration_bounds = array<i64: 2>, scalar_prefetch = 0 : i64, scratch_operands = 4 : i64, tpu.core_type = #tpu.core_type<tc>, window_params = [{transform_indices = @transform_0, window_bounds = array<i64: 1, 8, 8, 16>}, {pipeline_mode = #tpu.pipeline_mode<synchronous>, transform_indices = @transform_1, window_bounds = array<i64: 64, 8>}, {pipeline_mode = #tpu.pipeline_mode<synchronous>, transform_indices = @transform_2, window_bounds = array<i64: 76, 8>}, {pipeline_mode = #tpu.pipeline_mode<synchronous>, transform_indices = @transform_3, window_bounds = array<i64: 1, 16>}, {pipeline_mode = #tpu.pipeline_mode<synchronous>, transform_indices = @transform_4, window_bounds = array<i64: 1, 16>}, {pipeline_mode = #tpu.pipeline_mode<synchronous>, transform_indices = @transform_5, window_bounds = array<i64: 1, 8>}, {pipeline_mode = #tpu.pipeline_mode<synchronous>, transform_indices = @transform_6, window_bounds = array<i64: 1, 8>}, {transform_indices = @transform_7, window_bounds = array<i64: 64, 8>}]} {
    %c0 = arith.constant 0 : index
    %c0_0 = arith.constant 0 : index
    %c0_1 = arith.constant 0 : index
    %c0_2 = arith.constant 0 : index
    %0 = vector.load %arg1[%c0, %c0_0, %c0_1, %c0_2] : memref<1x8x8x16xf32, #tpu.memory_space<vmem>>, vector<1x8x8x16xf32>
    %c0_3 = arith.constant 0 : index
    %c0_4 = arith.constant 0 : index
    %1 = vector.load %arg4[%c0_3, %c0_4] : memref<1x16xf32, #tpu.memory_space<vmem>>, vector<1x16xf32>
    %2 = vector.shape_cast %1 : vector<1x16xf32> to vector<1x1x1x16xf32>
    %3 = vector.broadcast %2 : vector<1x1x1x16xf32> to vector<1x8x8x16xf32>
    %4 = arith.mulf %0, %3 : vector<1x8x8x16xf32>
    %c0_5 = arith.constant 0 : index
    %c0_6 = arith.constant 0 : index
    %5 = vector.load %arg5[%c0_5, %c0_6] : memref<1x16xf32, #tpu.memory_space<vmem>>, vector<1x16xf32>
    %6 = vector.shape_cast %5 : vector<1x16xf32> to vector<1x1x1x16xf32>
    %7 = vector.broadcast %6 : vector<1x1x1x16xf32> to vector<1x8x8x16xf32>
    %8 = arith.addf %4, %7 : vector<1x8x8x16xf32>
    %cst = arith.constant 0.000000e+00 : f32
    %9 = vector.broadcast %cst : f32 to vector<1x8x8x16xf32>
    %10 = arith.cmpf ogt, %8, %9 : vector<1x8x8x16xf32>
    %cst_7 = arith.constant 1.000000e-01 : f32
    %11 = vector.broadcast %cst_7 : f32 to vector<1x8x8x16xf32>
    %12 = arith.mulf %11, %8 : vector<1x8x8x16xf32>
    %13 = arith.select %10, %8, %12 : vector<1x8x8x16xi1>, vector<1x8x8x16xf32>
    %cst_8 = arith.constant 0.000000e+00 : f32
    %14 = vector.broadcast %cst_8 : f32 to vector<1x1x24x16xf32>
    %c0_9 = arith.constant 0 : index
    %c0_10 = arith.constant 0 : index
    %c0_11 = arith.constant 0 : index
    %c0_12 = arith.constant 0 : index
    %15 = vector.load %arg9[%c0_9, %c0_10, %c0_11, %c0_12] : memref<1x9x24x16xf32, #tpu.memory_space<vmem>>, vector<1x1x24x16xf32>
    tpu.vector_store %arg9[%c0_9, %c0_10, %c0_11, %c0_12], %14 {strides = array<i32>} : memref<1x9x24x16xf32, #tpu.memory_space<vmem>>, vector<1x1x24x16xf32>,
    %cst_13 = arith.constant 0.000000e+00 : f32
    %16 = vector.broadcast %cst_13 : f32 to vector<1x9x1x16xf32>
    %c0_14 = arith.constant 0 : index
    %c0_15 = arith.constant 0 : index
    %c15 = arith.constant 15 : index
    %c0_16 = arith.constant 0 : index
    %17 = vector.load %arg9[%c0_14, %c0_15, %c15, %c0_16] : memref<1x9x24x16xf32, #tpu.memory_space<vmem>>, vector<1x9x1x16xf32>
    tpu.vector_store %arg9[%c0_14, %c0_15, %c15, %c0_16], %16 {strides = array<i32>} : memref<1x9x24x16xf32, #tpu.memory_space<vmem>>, vector<1x9x1x16xf32>,
    %c0_17 = arith.constant 0 : index
    %c1 = arith.constant 1 : index
    %c16 = arith.constant 16 : index
    %c0_18 = arith.constant 0 : index
    %18 = vector.load %arg9[%c0_17, %c1, %c16, %c0_18] : memref<1x9x24x16xf32, #tpu.memory_space<vmem>>, vector<1x8x8x16xf32>
    tpu.vector_store %arg9[%c0_17, %c1, %c16, %c0_18], %13 {strides = array<i32>} : memref<1x9x24x16xf32, #tpu.memory_space<vmem>>, vector<1x8x8x16xf32>,
    %c0_19 = arith.constant 0 : index
    %c0_20 = arith.constant 0 : index
    %c15_21 = arith.constant 15 : index
    %c0_22 = arith.constant 0 : index
    %19 = vector.load %arg9[%c0_19, %c0_20, %c15_21, %c0_22] : memref<1x9x24x16xf32, #tpu.memory_space<vmem>>, vector<1x8x8x16xf32>
    %20 = vector.shape_cast %19 : vector<1x8x8x16xf32> to vector<8x8x16xf32>
    %21 = vector.shape_cast %20 : vector<8x8x16xf32> to vector<64x16xf32>
    %c0_23 = arith.constant 0 : index
    %c0_24 = arith.constant 0 : index
    %22 = vector.load %arg11[%c0_23, %c0_24] : memref<64x64xf32, #tpu.memory_space<vmem>>, vector<64x16xf32>
    tpu.vector_store %arg11[%c0_23, %c0_24], %21 {strides = array<i32>} : memref<64x64xf32, #tpu.memory_space<vmem>>, vector<64x16xf32>,
    %c0_25 = arith.constant 0 : index
    %c0_26 = arith.constant 0 : index
    %c16_27 = arith.constant 16 : index
    %c0_28 = arith.constant 0 : index
    %23 = vector.load %arg9[%c0_25, %c0_26, %c16_27, %c0_28] : memref<1x9x24x16xf32, #tpu.memory_space<vmem>>, vector<1x8x8x16xf32>
    %24 = vector.shape_cast %23 : vector<1x8x8x16xf32> to vector<8x8x16xf32>
    %25 = vector.shape_cast %24 : vector<8x8x16xf32> to vector<64x16xf32>
    %c0_29 = arith.constant 0 : index
    %c16_30 = arith.constant 16 : index
    %26 = vector.load %arg11[%c0_29, %c16_30] : memref<64x64xf32, #tpu.memory_space<vmem>>, vector<64x16xf32>
    tpu.vector_store %arg11[%c0_29, %c16_30], %25 {strides = array<i32>} : memref<64x64xf32, #tpu.memory_space<vmem>>, vector<64x16xf32>,
    %c0_31 = arith.constant 0 : index
    %c1_32 = arith.constant 1 : index
    %c15_33 = arith.constant 15 : index
    %c0_34 = arith.constant 0 : index
    %27 = vector.load %arg9[%c0_31, %c1_32, %c15_33, %c0_34] : memref<1x9x24x16xf32, #tpu.memory_space<vmem>>, vector<1x8x8x16xf32>
    %28 = vector.shape_cast %27 : vector<1x8x8x16xf32> to vector<8x8x16xf32>
    %29 = vector.shape_cast %28 : vector<8x8x16xf32> to vector<64x16xf32>
    %c0_35 = arith.constant 0 : index
    %c32 = arith.constant 32 : index
    %30 = vector.load %arg11[%c0_35, %c32] : memref<64x64xf32, #tpu.memory_space<vmem>>, vector<64x16xf32>
    tpu.vector_store %arg11[%c0_35, %c32], %29 {strides = array<i32>} : memref<64x64xf32, #tpu.memory_space<vmem>>, vector<64x16xf32>,
    %c0_36 = arith.constant 0 : index
    %c1_37 = arith.constant 1 : index
    %c16_38 = arith.constant 16 : index
    %c0_39 = arith.constant 0 : index
    %31 = vector.load %arg9[%c0_36, %c1_37, %c16_38, %c0_39] : memref<1x9x24x16xf32, #tpu.memory_space<vmem>>, vector<1x8x8x16xf32>
    %32 = vector.shape_cast %31 : vector<1x8x8x16xf32> to vector<8x8x16xf32>
    %33 = vector.shape_cast %32 : vector<8x8x16xf32> to vector<64x16xf32>
    %c0_40 = arith.constant 0 : index
    %c48 = arith.constant 48 : index
    %34 = vector.load %arg11[%c0_40, %c48] : memref<64x64xf32, #tpu.memory_space<vmem>>, vector<64x16xf32>
    tpu.vector_store %arg11[%c0_40, %c48], %33 {strides = array<i32>} : memref<64x64xf32, #tpu.memory_space<vmem>>, vector<64x16xf32>,
    %c0_41 = arith.constant 0 : index
    %c0_42 = arith.constant 0 : index
    %35 = vector.load %arg11[%c0_41, %c0_42] : memref<64x64xf32, #tpu.memory_space<vmem>>, vector<64x64xf32>
    %c0_43 = arith.constant 0 : index
    %c0_44 = arith.constant 0 : index
    %36 = vector.load %arg2[%c0_43, %c0_44] : memref<64x8xf32, #tpu.memory_space<vmem>>, vector<64x8xf32>
    %cst_45 = arith.constant dense<0.000000e+00> : vector<64x8xf32>
    %37 = tpu.matmul %35, %36, %cst_45 {dimension_numbers = #tpu.dot_dimension_numbers<[1], [0], [0], [1], [0, 0, 1, 1], [], []>} : vector<64x64xf32>, vector<64x8xf32>, vector<64x8xf32> -> vector<64x8xf32>
    %c0_46 = arith.constant 0 : index
    %c0_47 = arith.constant 0 : index
    %38 = vector.load %arg6[%c0_46, %c0_47] : memref<1x8xf32, #tpu.memory_space<vmem>>, vector<1x8xf32>
    %39 = vector.broadcast %38 : vector<1x8xf32> to vector<64x8xf32>
    %40 = arith.mulf %37, %39 : vector<64x8xf32>
    %c0_48 = arith.constant 0 : index
    %c0_49 = arith.constant 0 : index
    %41 = vector.load %arg7[%c0_48, %c0_49] : memref<1x8xf32, #tpu.memory_space<vmem>>, vector<1x8xf32>
    %42 = vector.broadcast %41 : vector<1x8xf32> to vector<64x8xf32>
    %43 = arith.addf %40, %42 : vector<64x8xf32>
    %cst_50 = arith.constant 0.000000e+00 : f32
    %44 = vector.broadcast %cst_50 : f32 to vector<64x8xf32>
    %45 = arith.cmpf ogt, %43, %44 : vector<64x8xf32>
    %cst_51 = arith.constant 1.000000e-01 : f32
    %46 = vector.broadcast %cst_51 : f32 to vector<64x8xf32>
    %47 = arith.mulf %46, %43 : vector<64x8xf32>
    %48 = arith.select %45, %43, %47 : vector<64x8xi1>, vector<64x8xf32>
    %cst_52 = arith.constant 0.000000e+00 : f32
    %49 = vector.broadcast %cst_52 : f32 to vector<1x1x25x8xf32>
    %c0_53 = arith.constant 0 : index
    %c0_54 = arith.constant 0 : index
    %c0_55 = arith.constant 0 : index
    %c0_56 = arith.constant 0 : index
    %50 = vector.load %arg10[%c0_53, %c0_54, %c0_55, %c0_56] : memref<1x10x25x8xf32, #tpu.memory_space<vmem>>, vector<1x1x25x8xf32>
    tpu.vector_store %arg10[%c0_53, %c0_54, %c0_55, %c0_56], %49 {strides = array<i32>} : memref<1x10x25x8xf32, #tpu.memory_space<vmem>>, vector<1x1x25x8xf32>,
    %cst_57 = arith.constant 0.000000e+00 : f32
    %51 = vector.broadcast %cst_57 : f32 to vector<1x1x25x8xf32>
    %c0_58 = arith.constant 0 : index
    %c9 = arith.constant 9 : index
    %c0_59 = arith.constant 0 : index
    %c0_60 = arith.constant 0 : index
    %52 = vector.load %arg10[%c0_58, %c9, %c0_59, %c0_60] : memref<1x10x25x8xf32, #tpu.memory_space<vmem>>, vector<1x1x25x8xf32>
    tpu.vector_store %arg10[%c0_58, %c9, %c0_59, %c0_60], %51 {strides = array<i32>} : memref<1x10x25x8xf32, #tpu.memory_space<vmem>>, vector<1x1x25x8xf32>,
    %cst_61 = arith.constant 0.000000e+00 : f32
    %53 = vector.broadcast %cst_61 : f32 to vector<1x10x1x8xf32>
    %c0_62 = arith.constant 0 : index
    %c0_63 = arith.constant 0 : index
    %c15_64 = arith.constant 15 : index
    %c0_65 = arith.constant 0 : index
    %54 = vector.load %arg10[%c0_62, %c0_63, %c15_64, %c0_65] : memref<1x10x25x8xf32, #tpu.memory_space<vmem>>, vector<1x10x1x8xf32>
    tpu.vector_store %arg10[%c0_62, %c0_63, %c15_64, %c0_65], %53 {strides = array<i32>} : memref<1x10x25x8xf32, #tpu.memory_space<vmem>>, vector<1x10x1x8xf32>,
    %cst_66 = arith.constant 0.000000e+00 : f32
    %55 = vector.broadcast %cst_66 : f32 to vector<1x10x1x8xf32>
    %c0_67 = arith.constant 0 : index
    %c0_68 = arith.constant 0 : index
    %c24 = arith.constant 24 : index
    %c0_69 = arith.constant 0 : index
    %56 = vector.load %arg10[%c0_67, %c0_68, %c24, %c0_69] : memref<1x10x25x8xf32, #tpu.memory_space<vmem>>, vector<1x10x1x8xf32>
    tpu.vector_store %arg10[%c0_67, %c0_68, %c24, %c0_69], %55 {strides = array<i32>} : memref<1x10x25x8xf32, #tpu.memory_space<vmem>>, vector<1x10x1x8xf32>,
    %57 = vector.shape_cast %48 : vector<64x8xf32> to vector<8x8x8xf32>
    %c0_70 = arith.constant 0 : index
    %c1_71 = arith.constant 1 : index
    %c16_72 = arith.constant 16 : index
    %c0_73 = arith.constant 0 : index
    %58 = vector.load %arg10[%c0_70, %c1_71, %c16_72, %c0_73] : memref<1x10x25x8xf32, #tpu.memory_space<vmem>>, vector<1x8x8x8xf32>
    %59 = vector.shape_cast %58 : vector<1x8x8x8xf32> to vector<8x8x8xf32>
    %60 = vector.shape_cast %57 : vector<8x8x8xf32> to vector<1x8x8x8xf32>
    tpu.vector_store %arg10[%c0_70, %c1_71, %c16_72, %c0_73], %60 {strides = array<i32>} : memref<1x10x25x8xf32, #tpu.memory_space<vmem>>, vector<1x8x8x8xf32>,
    %c0_74 = arith.constant 0 : index
    %c0_75 = arith.constant 0 : index
    %c15_76 = arith.constant 15 : index
    %c0_77 = arith.constant 0 : index
    %61 = vector.load %arg10[%c0_74, %c0_75, %c15_76, %c0_77] : memref<1x10x25x8xf32, #tpu.memory_space<vmem>>, vector<1x8x8x8xf32>
    %62 = vector.shape_cast %61 : vector<1x8x8x8xf32> to vector<8x8x8xf32>
    %63 = vector.shape_cast %62 : vector<8x8x8xf32> to vector<64x8xf32>
    %c0_78 = arith.constant 0 : index
    %c0_79 = arith.constant 0 : index
    %64 = vector.load %arg12[%c0_78, %c0_79] : memref<64x76xf32, #tpu.memory_space<vmem>>, vector<64x8xf32>
    tpu.vector_store %arg12[%c0_78, %c0_79], %63 {strides = array<i32>} : memref<64x76xf32, #tpu.memory_space<vmem>>, vector<64x8xf32>,
    %c0_80 = arith.constant 0 : index
    %c0_81 = arith.constant 0 : index
    %c16_82 = arith.constant 16 : index
    %c0_83 = arith.constant 0 : index
    %65 = vector.load %arg10[%c0_80, %c0_81, %c16_82, %c0_83] : memref<1x10x25x8xf32, #tpu.memory_space<vmem>>, vector<1x8x8x8xf32>
    %66 = vector.shape_cast %65 : vector<1x8x8x8xf32> to vector<8x8x8xf32>
    %67 = vector.shape_cast %66 : vector<8x8x8xf32> to vector<64x8xf32>
    %c0_84 = arith.constant 0 : index
    %c8 = arith.constant 8 : index
    %68 = vector.load %arg12[%c0_84, %c8] : memref<64x76xf32, #tpu.memory_space<vmem>>, vector<64x8xf32>
    tpu.vector_store %arg12[%c0_84, %c8], %67 {strides = array<i32>} : memref<64x76xf32, #tpu.memory_space<vmem>>, vector<64x8xf32>,
    %c0_85 = arith.constant 0 : index
    %c0_86 = arith.constant 0 : index
    %c17 = arith.constant 17 : index
    %c0_87 = arith.constant 0 : index
    %69 = vector.load %arg10[%c0_85, %c0_86, %c17, %c0_87] : memref<1x10x25x8xf32, #tpu.memory_space<vmem>>, vector<1x8x8x8xf32>
    %70 = vector.shape_cast %69 : vector<1x8x8x8xf32> to vector<8x8x8xf32>
    %71 = vector.shape_cast %70 : vector<8x8x8xf32> to vector<64x8xf32>
    %c0_88 = arith.constant 0 : index
    %c16_89 = arith.constant 16 : index
    %72 = vector.load %arg12[%c0_88, %c16_89] : memref<64x76xf32, #tpu.memory_space<vmem>>, vector<64x8xf32>
    tpu.vector_store %arg12[%c0_88, %c16_89], %71 {strides = array<i32>} : memref<64x76xf32, #tpu.memory_space<vmem>>, vector<64x8xf32>,
    %c0_90 = arith.constant 0 : index
    %c1_91 = arith.constant 1 : index
    %c15_92 = arith.constant 15 : index
    %c0_93 = arith.constant 0 : index
    %73 = vector.load %arg10[%c0_90, %c1_91, %c15_92, %c0_93] : memref<1x10x25x8xf32, #tpu.memory_space<vmem>>, vector<1x8x8x8xf32>
    %74 = vector.shape_cast %73 : vector<1x8x8x8xf32> to vector<8x8x8xf32>
    %75 = vector.shape_cast %74 : vector<8x8x8xf32> to vector<64x8xf32>
    %c0_94 = arith.constant 0 : index
    %c24_95 = arith.constant 24 : index
    %76 = vector.load %arg12[%c0_94, %c24_95] : memref<64x76xf32, #tpu.memory_space<vmem>>, vector<64x8xf32>
    tpu.vector_store %arg12[%c0_94, %c24_95], %75 {strides = array<i32>} : memref<64x76xf32, #tpu.memory_space<vmem>>, vector<64x8xf32>,
    %c0_96 = arith.constant 0 : index
    %c1_97 = arith.constant 1 : index
    %c16_98 = arith.constant 16 : index
    %c0_99 = arith.constant 0 : index
    %77 = vector.load %arg10[%c0_96, %c1_97, %c16_98, %c0_99] : memref<1x10x25x8xf32, #tpu.memory_space<vmem>>, vector<1x8x8x8xf32>
    %78 = vector.shape_cast %77 : vector<1x8x8x8xf32> to vector<8x8x8xf32>
    %79 = vector.shape_cast %78 : vector<8x8x8xf32> to vector<64x8xf32>
    %c0_100 = arith.constant 0 : index
    %c32_101 = arith.constant 32 : index
    %80 = vector.load %arg12[%c0_100, %c32_101] : memref<64x76xf32, #tpu.memory_space<vmem>>, vector<64x8xf32>
    tpu.vector_store %arg12[%c0_100, %c32_101], %79 {strides = array<i32>} : memref<64x76xf32, #tpu.memory_space<vmem>>, vector<64x8xf32>,
    %c0_102 = arith.constant 0 : index
    %c1_103 = arith.constant 1 : index
    %c17_104 = arith.constant 17 : index
    %c0_105 = arith.constant 0 : index
    %81 = vector.load %arg10[%c0_102, %c1_103, %c17_104, %c0_105] : memref<1x10x25x8xf32, #tpu.memory_space<vmem>>, vector<1x8x8x8xf32>
    %82 = vector.shape_cast %81 : vector<1x8x8x8xf32> to vector<8x8x8xf32>
    %83 = vector.shape_cast %82 : vector<8x8x8xf32> to vector<64x8xf32>
    %c0_106 = arith.constant 0 : index
    %c40 = arith.constant 40 : index
    %84 = vector.load %arg12[%c0_106, %c40] : memref<64x76xf32, #tpu.memory_space<vmem>>, vector<64x8xf32>
    tpu.vector_store %arg12[%c0_106, %c40], %83 {strides = array<i32>} : memref<64x76xf32, #tpu.memory_space<vmem>>, vector<64x8xf32>,
    %c0_107 = arith.constant 0 : index
    %c2 = arith.constant 2 : index
    %c15_108 = arith.constant 15 : index
    %c0_109 = arith.constant 0 : index
    %85 = vector.load %arg10[%c0_107, %c2, %c15_108, %c0_109] : memref<1x10x25x8xf32, #tpu.memory_space<vmem>>, vector<1x8x8x8xf32>
    %86 = vector.shape_cast %85 : vector<1x8x8x8xf32> to vector<8x8x8xf32>
    %87 = vector.shape_cast %86 : vector<8x8x8xf32> to vector<64x8xf32>
    %c0_110 = arith.constant 0 : index
    %c48_111 = arith.constant 48 : index
    %88 = vector.load %arg12[%c0_110, %c48_111] : memref<64x76xf32, #tpu.memory_space<vmem>>, vector<64x8xf32>
    tpu.vector_store %arg12[%c0_110, %c48_111], %87 {strides = array<i32>} : memref<64x76xf32, #tpu.memory_space<vmem>>, vector<64x8xf32>,
    %c0_112 = arith.constant 0 : index
    %c2_113 = arith.constant 2 : index
    %c16_114 = arith.constant 16 : index
    %c0_115 = arith.constant 0 : index
    %89 = vector.load %arg10[%c0_112, %c2_113, %c16_114, %c0_115] : memref<1x10x25x8xf32, #tpu.memory_space<vmem>>, vector<1x8x8x8xf32>
    %90 = vector.shape_cast %89 : vector<1x8x8x8xf32> to vector<8x8x8xf32>
    %91 = vector.shape_cast %90 : vector<8x8x8xf32> to vector<64x8xf32>
    %c0_116 = arith.constant 0 : index
    %c56 = arith.constant 56 : index
    %92 = vector.load %arg12[%c0_116, %c56] : memref<64x76xf32, #tpu.memory_space<vmem>>, vector<64x8xf32>
    tpu.vector_store %arg12[%c0_116, %c56], %91 {strides = array<i32>} : memref<64x76xf32, #tpu.memory_space<vmem>>, vector<64x8xf32>,
    %c0_117 = arith.constant 0 : index
    %c2_118 = arith.constant 2 : index
    %c17_119 = arith.constant 17 : index
    %c0_120 = arith.constant 0 : index
    %93 = vector.load %arg10[%c0_117, %c2_118, %c17_119, %c0_120] : memref<1x10x25x8xf32, #tpu.memory_space<vmem>>, vector<1x8x8x8xf32>
    %94 = vector.shape_cast %93 : vector<1x8x8x8xf32> to vector<8x8x8xf32>
    %95 = vector.shape_cast %94 : vector<8x8x8xf32> to vector<64x8xf32>
    %c0_121 = arith.constant 0 : index
    %c64 = arith.constant 64 : index
    %96 = vector.load %arg12[%c0_121, %c64] : memref<64x76xf32, #tpu.memory_space<vmem>>, vector<64x8xf32>
    tpu.vector_store %arg12[%c0_121, %c64], %95 {strides = array<i32>} : memref<64x76xf32, #tpu.memory_space<vmem>>, vector<64x8xf32>,
    %97 = vector.extract_strided_slice %0 {offsets = [0, 0, 0, 0], sizes = [1, 8, 8, 4], strides = [1, 1, 1, 1]} : vector<1x8x8x16xf32> to vector<1x8x8x4xf32>
    %98 = vector.shape_cast %97 : vector<1x8x8x4xf32> to vector<8x8x4xf32>
    %99 = vector.shape_cast %98 : vector<8x8x4xf32> to vector<64x4xf32>
    %c0_122 = arith.constant 0 : index
    %c72 = arith.constant 72 : index
    %100 = vector.load %arg12[%c0_122, %c72] : memref<64x76xf32, #tpu.memory_space<vmem>>, vector<64x4xf32>
    tpu.vector_store %arg12[%c0_122, %c72], %99 {strides = array<i32>} : memref<64x76xf32, #tpu.memory_space<vmem>>, vector<64x4xf32>,
    %c0_123 = arith.constant 0 : index
    %c0_124 = arith.constant 0 : index
    %101 = vector.load %arg12[%c0_123, %c0_124] : memref<64x76xf32, #tpu.memory_space<vmem>>, vector<64x76xf32>
    %c0_125 = arith.constant 0 : index
    %c0_126 = arith.constant 0 : index
    %102 = vector.load %arg3[%c0_125, %c0_126] : memref<76x8xf32, #tpu.memory_space<vmem>>, vector<76x8xf32>
    %cst_127 = arith.constant dense<0.000000e+00> : vector<64x8xf32>
    %103 = tpu.matmul %101, %102, %cst_127 {dimension_numbers = #tpu.dot_dimension_numbers<[1], [0], [0], [1], [0, 0, 1, 1], [], []>} : vector<64x76xf32>, vector<76x8xf32>, vector<64x8xf32> -> vector<64x8xf32>
    %c0_128 = arith.constant 0 : index
    %c0_129 = arith.constant 0 : index
    %104 = vector.load %arg8[%c0_128, %c0_129] : memref<64x8xf32, #tpu.memory_space<vmem>>, vector<64x8xf32>
    tpu.vector_store %arg8[%c0_128, %c0_129], %103 {strides = array<i32>} : memref<64x8xf32, #tpu.memory_space<vmem>>, vector<64x8xf32>,
    return
  }
  func.func @transform_0(%arg0: i32) -> (i32, i32, i32, i32) {
    %c0_i32 = arith.constant 0 : i32
    %c0_i32_0 = arith.constant 0 : i32
    %c0_i32_1 = arith.constant 0 : i32
    %c0_i32_2 = arith.constant 0 : i32
    return %arg0, %c0_i32, %c0_i32_0, %c0_i32_1 : i32, i32, i32, i32
  }
  func.func @transform_1(%arg0: i32) -> (i32, i32) {
    %c0_i32 = arith.constant 0 : i32
    %c0_i32_0 = arith.constant 0 : i32
    %c0_i32_1 = arith.constant 0 : i32
    return %c0_i32, %c0_i32_0 : i32, i32
  }
  func.func @transform_2(%arg0: i32) -> (i32, i32) {
    %c0_i32 = arith.constant 0 : i32
    %c0_i32_0 = arith.constant 0 : i32
    %c0_i32_1 = arith.constant 0 : i32
    return %c0_i32, %c0_i32_0 : i32, i32
  }
  func.func @transform_3(%arg0: i32) -> (i32, i32) {
    %c0_i32 = arith.constant 0 : i32
    %c0_i32_0 = arith.constant 0 : i32
    %c0_i32_1 = arith.constant 0 : i32
    return %c0_i32, %c0_i32_0 : i32, i32
  }
  func.func @transform_4(%arg0: i32) -> (i32, i32) {
    %c0_i32 = arith.constant 0 : i32
    %c0_i32_0 = arith.constant 0 : i32
    %c0_i32_1 = arith.constant 0 : i32
    return %c0_i32, %c0_i32_0 : i32, i32
  }
  func.func @transform_5(%arg0: i32) -> (i32, i32) {
    %c0_i32 = arith.constant 0 : i32
    %c0_i32_0 = arith.constant 0 : i32
    %c0_i32_1 = arith.constant 0 : i32
    return %c0_i32, %c0_i32_0 : i32, i32
  }
  func.func @transform_6(%arg0: i32) -> (i32, i32) {
    %c0_i32 = arith.constant 0 : i32
    %c0_i32_0 = arith.constant 0 : i32
    %c0_i32_1 = arith.constant 0 : i32
    return %c0_i32, %c0_i32_0 : i32, i32
  }
  func.func @transform_7(%arg0: i32) -> (i32, i32) {
    %c0_i32 = arith.constant 0 : i32
    %c0_i32_0 = arith.constant 0 : i32
    return %arg0, %c0_i32 : i32, i32
  }
}

</mosaic_0001>

<bundles_post_ra>
// kernel: tpu_custom_call.1
= control target key start
LH: loop header
LB: loop body
LE: loop exit
PB: predicated region body
PF: predicated region fallthrough
CT: control target
= control target key end

     0   :  { %s1637_s24 = smov 0   ;;  %s2134_s0 = inlined_call_operand.vmem [shape: f32[2,8,8,16], index: 0, kind: input, shape index: {}]   ;;  %s2135_s1 = inlined_call_operand.vmem [shape: f32[64,8], index: 1, kind: input, shape index: {}]   ;;  %s2136_s2 = inlined_call_operand.vmem [shape: f32[76,8], index: 2, kind: input, shape index: {}]   ;;  %s2137_s3 = inlined_call_operand.vmem [shape: f32[1,16], index: 3, kind: input, shape index: {}]   ;;  %s2138_s4 = inlined_call_operand.vmem [shape: f32[1,16], index: 4, kind: input, shape index: {}]   ;;  %s2139_s5 = inlined_call_operand.vmem [shape: f32[1,8], index: 5, kind: input, shape index: {}]   ;;  %s2140_s6 = inlined_call_operand.vmem [shape: f32[1,8], index: 6, kind: input, shape index: {}]   ;;  %s2141_s7 = inlined_call_operand.vmem [shape: f32[128,8], index: 7, kind: output, shape index: {}]  }
   0x1 LB: > { %s1643_s25 = sadd.s32 4294967295, %s1585_s24   ;;  %p1438_p0 = scmp.ge.s32.totalorder %s1585_s24, 1  ;;  %s1585_s24 = sphi %s1637_s24, %s17_s24  }
   0x2   : > { %p237_p1 = scmp.lt.s32.totalorder %s1585_s24, 3 }
   0x4   : > { %p238_p2 = pnand %p1438_p0, %p237_p1 }
   0x5   : > { %p269_p3 = scmp.lt.s32.totalorder (!%p238_p2), %s1643_s25, 1  ;;  %s1588_s12 = smov (!%p238_p2), 16  }
   0x6   : > { %241 = sbr.rel (%p238_p2) target bundleno = 811 (0x32b), region = 48  ;;  %s1589_s29 = smov (!%p238_p2), 32  }
   0x7   : > { %s1591_s10 = smov (!%p238_p2), 72   ;;  %s1592_s11 = smov (!%p238_p2), 8  }
   0x8   : > { %s1593_s13 = smov (!%p238_p2), 56   ;;  %s1594_s18 = smov (!%p238_p2), 24  }
   0x9   : > { %s1595_s19 = smov (!%p238_p2), 40   ;;  %s1596_s20 = smov (!%p238_p2), 64  }
   0xb   : > { %vm342_vm0 = vcmask 130048   ;;  %v1587_v0 = vmov 0.0   ;;  %vm346_vm1 = vcmask 122880   ;;  %s270_s26 = scalar_select %p269_p3, %s1643_s25, 1  ;;  %v1443_v1 = vld [vmem:[%s2137_s3] ss:$0 sm:$0xff] }
   0xc   : > { %345 = vst.msk [vmem:[#allocation2 + $0x10] sm:$0xff] %vm342_vm0, %v1587_v0  ;;  %344 = vst.msk [vmem:[#allocation2 + $0x8] sm:$0xff] %vm342_vm0, %v1587_v0  ;;  %v1444_v2 = vld [vmem:[%s2138_s4] ss:$0 sm:$0xff]  ;;  %v543_v23 = vld [vmem:[%s2135_s1 + $0x38] sm:$0xff]  ;;  %vm728_vm10 = vcmask 64512  }
   0xd   : > { %348 = vst.msk [vmem:[#allocation2 + $0x27] sm:$0x1] %vm346_vm1, %v1587_v0  ;;  %347 = vst.msk [vmem:[#allocation2 + $0xf] sm:$0x1] %vm346_vm1, %v1587_v0  ;;  %s1466_s27 = sshll.u32 %s270_s26, 6  ;;  %v542_v24 = vld [vmem:[%s2135_s1 + $0x30] sm:$0xff]  ;;  %1501 = vmatprep.subr.mxu0 %v543_v23 }
   0xe   : > { %349 = vst.msk [vmem:[#allocation2 + $0x3f] sm:$0x1] %vm346_vm1, %v1587_v0  ;;  %350 = vst.msk [vmem:[#allocation2 + $0x57] sm:$0x1] %vm346_vm1, %v1587_v0  ;;  %s273_s9 = scalar_lea.vmem %s2134_s0, %s1466_s27  ;;  %1502 = vmatpush3.msra.mxu0 %v543_v23  ;;  %v541_v36 = vld [vmem:[%s2135_s1 + $0x28] sm:$0xff]  ;;  %v540_v37 = vld [vmem:[%s2135_s1 + $0x20] sm:$0xff] }
   0xf   : > { %351 = vst.msk [vmem:[#allocation2 + $0x6f] sm:$0x1] %vm346_vm1, %v1587_v0  ;;  %352 = vst.msk [vmem:[#allocation2 + $0x87] sm:$0x1] %vm346_vm1, %v1587_v0  ;;  %v1671_v3 = vld [vmem:[%s273_s9] sm:$0xff]  ;;  %v1673_v4 = vld [vmem:[%s273_s9 + $0x8] sm:$0xff]  ;;  %1503 = vmatprep.subr.mxu0 %v542_v24 }
  0x10   : > { %353 = vst.msk [vmem:[#allocation2 + $0x9f] sm:$0x1] %vm346_vm1, %v1587_v0  ;;  %354 = vst.msk [vmem:[#allocation2 + $0xb7] sm:$0x1] %vm346_vm1, %v1587_v0  ;;  %v1675_v5 = vld [vmem:[%s273_s9 + $0x10] sm:$0xff]  ;;  %v295_v6 = vmul.f32 %v1443_v1, %v1671_v3  ;;  %v296_v7 = vmul.f32 %v1443_v1, %v1673_v4  ;;  %v1680_v9 = vld [vmem:[%s273_s9 + $0x18] sm:$0xff]  ;;  %1504 = vmatpush3.msra.mxu0 %v542_v24 }
  0x11   : > { %355 = vst.msk [vmem:[#allocation2 + $0xcf] sm:$0x1] %vm346_vm1, %v1587_v0  ;;  %v297_v8 = vmul.f32 %v1443_v1, %v1675_v5  ;;  %v1682_v10 = vld [vmem:[%s273_s9 + $0x20] sm:$0xff]  ;;  %v1684_v11 = vld [vmem:[%s273_s9 + $0x28] sm:$0xff]  ;;  %v298_v13 = vmul.f32 %v1443_v1, %v1680_v9  ;;  %v1689_v16 = vld [vmem:[%s273_s9 + $0x30] sm:$0xff]  ;;  %1505 = vmatprep.subr.mxu0 %v541_v36  ;;  %vm732_vm11 = vcmask 57344  }
  0x12   : > { %v299_v14 = vmul.f32 %v1443_v1, %v1682_v10  ;;  %v300_v15 = vmul.f32 %v1443_v1, %v1684_v11  ;;  %v1691_v17 = vld [vmem:[%s273_s9 + $0x38] sm:$0xff]  ;;  %v310_v18 = vadd.f32 %v1444_v2, %v295_v6  ;;  %v311_v19 = vadd.f32 %v1444_v2, %v296_v7  ;;  %1506 = vmatpush3.msra.mxu0 %v541_v36  ;;  %v538_v48 = vld [vmem:[%s2135_s1 + $0x10] sm:$0xff]  ;;  %v537_v51 = vld [vmem:[%s2135_s1 + $0x8] sm:$0xff]  ;;  %s1590_s9 = smov 48  }
  0x13   : > { %v381_v12 = vld [vmem:[#allocation2 + $0x10] sm:$0xff]  ;;  %v312_v20 = vadd.f32 %v1444_v2, %v297_v8  ;;  %v301_v21 = vmul.f32 %v1443_v1, %v1689_v16  ;;  %v313_v25 = vadd.f32 %v1444_v2, %v298_v13  ;;  %v302_v28 = vmul.f32 %v1443_v1, %v1691_v17  ;;  %1507 = vmatprep.subr.mxu0 %v540_v37  ;;  %v539_v45 = vld [vmem:[%s2135_s1 + $0x18] sm:$0xff]  ;;  %v536_v59 = vld [vmem:[%s2135_s1] sm:$0xff] }
  0x14   : > { %397 = vrot.lane.b32.xlu0 %v381_v12, %s1588_s12  ;;  %v365_v22 = vld [vmem:[#allocation2 + $0xf] sm:$0xff]  ;;  %v314_v26 = vadd.f32 %v1444_v2, %v299_v14  ;;  %v315_v27 = vadd.f32 %v1444_v2, %v300_v15  ;;  %vm318_vm2 = vcmp.gt.f32.partialorder %v310_v18, 0.0  ;;  %v326_v29 = vmul.f32 0.1, %v310_v18  ;;  %1508 = vmatpush3.msra.mxu0 %v540_v37  ;;  %731 = vst.msk [vmem:[#allocation3 + $0x10] sm:$0xff] %vm728_vm10, %v1587_v0 }
  0x15   : > { %373 = vst.msk [vmem:[#allocation4] sm:$0xff] %vm342_vm0, %v365_v22  ;;  %vm319_vm3 = vcmp.gt.f32.partialorder %v311_v19, 0.0  ;;  %v327_v30 = vmul.f32 0.1, %v311_v19  ;;  %vm320_vm4 = vcmp.gt.f32.partialorder %v312_v20, 0.0  ;;  %vm321_vm5 = vcmp.gt.f32.partialorder %v313_v25, 0.0  ;;  %1509 = vmatprep.subr.mxu0 %v539_v45 }
  0x16   : > { %v328_v31 = vmul.f32 0.1, %v312_v20  ;;  %v329_v32 = vmul.f32 0.1, %v313_v25  ;;  %v334_v33 = vsel %vm318_vm2, %v310_v18, %v326_v29  ;;  %vm322_vm6 = vcmp.gt.f32.partialorder %v314_v26, 0.0  ;;  %1510 = vmatpush3.msra.mxu0 %v539_v45  ;;  %730 = vst.msk [vmem:[#allocation3 + $0x8] sm:$0xff] %vm728_vm10, %v1587_v0 }
  0x17   : > { %v335_v34 = vsel %vm319_vm3, %v311_v19, %v327_v30  ;;  %v330_v35 = vmul.f32 0.1, %v314_v26  ;;  %357 = vst.msk [vmem:[#allocation2 + $0x28] sm:$0xff] %vm342_vm0, %v334_v33  ;;  %vm323_vm7 = vcmp.gt.f32.partialorder %v315_v27, 0.0  ;;  %v331_v40 = vmul.f32 0.1, %v315_v27  ;;  %1511 = vmatprep.subr.mxu0 %v538_v48 }
  0x18   : > { %358 = vst.msk [vmem:[#allocation2 + $0x40] sm:$0xff] %vm342_vm0, %v335_v34  ;;  %v336_v38 = vsel %vm320_vm4, %v312_v20, %v328_v31  ;;  %v337_v39 = vsel %vm321_vm5, %v313_v25, %v329_v32  ;;  %v316_v42 = vadd.f32 %v1444_v2, %v301_v21  ;;  %v317_v43 = vadd.f32 %v1444_v2, %v302_v28 }
  0x19   : > { %359 = vst.msk [vmem:[#allocation2 + $0x58] sm:$0xff] %vm342_vm0, %v336_v38  ;;  %360 = vst.msk [vmem:[#allocation2 + $0x70] sm:$0xff] %vm342_vm0, %v337_v39  ;;  %v338_v41 = vsel %vm322_vm6, %v314_v26, %v330_v35  ;;  %v339_v44 = vsel %vm323_vm7, %v315_v27, %v331_v40  ;;  %1512 = vmatpush3.msra.mxu0 %v538_v48  ;;  %vm421_vm12 = vcmask 261248   ;;  %vm470_vm13 = vcmask 392448   ;;  %v1870_v48 = vld [vmem:[%s2140_s6] ss:$0 sm:$0xff] }
  0x1a   : > { %361 = vst.msk [vmem:[#allocation2 + $0x88] sm:$0xff] %vm342_vm0, %v338_v41  ;;  %362 = vst.msk [vmem:[#allocation2 + $0xa0] sm:$0xff] %vm342_vm0, %v339_v44  ;;  %vm324_vm8 = vcmp.gt.f32.partialorder %v316_v42, 0.0  ;;  %v332_v46 = vmul.f32 0.1, %v316_v42  ;;  %vm325_vm9 = vcmp.gt.f32.partialorder %v317_v43, 0.0  ;;  %1513 = vmatprep.subr.mxu0 %v537_v51 }
  0x1b   : > { %v333_v47 = vmul.f32 0.1, %v317_v43  ;;  %1514 = vmatpush3.msra.mxu0 %v537_v51  ;;  %736 = vst.msk [vmem:[#allocation3 + $0x128] sm:$0xff] %vm728_vm10, %v1587_v0  ;;  %737 = vst.msk [vmem:[#allocation3 + $0x130] sm:$0xff] %vm728_vm10, %v1587_v0  ;;  %v784_v12 = vld [vmem:[#allocation3 + $0x10] sm:$0xff]  ;;  %vm519_vm14 = vcmask 523648  }
  0x1c   : > { %v340_v49 = vsel %vm324_vm8, %v316_v42, %v332_v46  ;;  %1515 = vmatprep.subr.mxu0 %v536_v59  ;;  %733 = vst.msk [vmem:[#allocation3 + $0x18] sm:$0x1] %vm732_vm11, %v1587_v0  ;;  %738 = vst.msk [vmem:[#allocation3 + $0x138] sm:$0x1] %vm732_vm11, %v1587_v0  ;;  %vm544_vm15 = vcmask 523264   ;;  %vm873_vm1 = vcmask 195712  }
  0x1d   : > { %v341_v50 = vsel %vm325_vm9, %v317_v43, %v333_v47  ;;  %363 = vst.msk [vmem:[#allocation2 + $0xb8] sm:$0xff] %vm342_vm0, %v340_v49  ;;  %1516 = vmatpush3.msra.mxu0 %v536_v59  ;;  %v1865_v46 = vld [vmem:[%s2139_s5] ss:$0 sm:$0xff] }
  0x1e   : > { %364 = vst.msk [vmem:[#allocation2 + $0xd0] sm:$0xff] %vm342_vm0, %v341_v50  ;;  %v430_v52 = vld [vmem:[#allocation2 + $0x27] sm:$0xff] }
  0x1f   : > { %v382_v53 = vld [vmem:[#allocation2 + $0x28] sm:$0xff]  ;;  %v431_v54 = vld [vmem:[#allocation2 + $0x3f] sm:$0xff]  ;;  %446 = vrot.lane.b32.xlu1 %v430_v52, %s1589_s29  ;;  %374 = vst.msk [vmem:[#allocation4 + $0x8] sm:$0xff] %vm342_vm0, %v430_v52 }
  0x20   : > { %399 = vrot.lane.b32.xlu0 %v382_v53, %s1588_s12  ;;  %v432_v55 = vld [vmem:[#allocation2 + $0x57] sm:$0xff]  ;;  %375 = vst.msk [vmem:[#allocation4 + $0x10] sm:$0xff] %vm342_vm0, %v431_v54  ;;  %v433_v56 = vld [vmem:[#allocation2 + $0x6f] sm:$0xff]  ;;  %v480_v60 = vld [vmem:[#allocation2 + $0x40] sm:$0xff] }
  0x21   : > { %376 = vst.msk [vmem:[#allocation4 + $0x18] sm:$0xff] %vm342_vm0, %v432_v55  ;;  %v434_v57 = vld [vmem:[#allocation2 + $0x87] sm:$0xff]  ;;  %v435_v58 = vld [vmem:[#allocation2 + $0x9f] sm:$0xff]  ;;  %377 = vst.msk [vmem:[#allocation4 + $0x20] sm:$0xff] %vm342_vm0, %v433_v56 }
  0x22   : > { %378 = vst.msk [vmem:[#allocation4 + $0x28] sm:$0xff] %vm342_vm0, %v434_v57  ;;  %379 = vst.msk [vmem:[#allocation4 + $0x30] sm:$0xff] %vm342_vm0, %v435_v58  ;;  %v384_v62 = vld [vmem:[#allocation2 + $0x58] sm:$0xff]  ;;  %v482_v63 = vld [vmem:[#allocation2 + $0x70] sm:$0xff] }
  0x23   : > { %448 = vrot.lane.b32.xlu1 %v431_v54, %s1589_s29  ;;  %v386_v1 = vld [vmem:[#allocation2 + $0x88] sm:$0xff]  ;;  %v484_v2 = vld [vmem:[#allocation2 + $0xa0] sm:$0xff]  ;;  %740 = vst.msk [vmem:[#allocation3 + $0x2f] sm:$0x1] %vm732_vm11, %v1587_v0  ;;  %741 = vst.msk [vmem:[#allocation3 + $0x4f] sm:$0x1] %vm732_vm11, %v1587_v0 }
  0x24   : > { %495 = vrot.lane.b32.xlu0 %v382_v53, %s1590_s9  ;;  %v436_v61 = vld [vmem:[#allocation2 + $0xb7] sm:$0xff]  ;;  %742 = vst.msk [vmem:[#allocation3 + $0x6f] sm:$0x1] %vm732_vm11, %v1587_v0  ;;  %743 = vst.msk [vmem:[#allocation3 + $0x8f] sm:$0x1] %vm732_vm11, %v1587_v0  ;;  %v1086_v42 = vld [vmem:[#allocation3 + $0x130] sm:$0xff] }
  0x25   : > { %380 = vst.msk [vmem:[#allocation4 + $0x38] sm:$0xff] %vm342_vm0, %v436_v61  ;;  %v388_v6 = vld [vmem:[#allocation2 + $0xb8] sm:$0xff]  ;;  %v437_v7 = vld [vmem:[#allocation2 + $0xcf] sm:$0xff]  ;;  %vm824_vm0 = vcmask 130112  }
  0x26   : > { %744 = vst.msk [vmem:[#allocation3 + $0xaf] sm:$0x1] %vm732_vm11, %v1587_v0  ;;  %745 = vst.msk [vmem:[#allocation3 + $0xcf] sm:$0x1] %vm732_vm11, %v1587_v0  ;;  %v486_v8 = vld [vmem:[#allocation2 + $0xd0] sm:$0xff] }
  0x27   : > { %497 = vrot.lane.b32.xlu1 %v480_v60, %s1590_s9  ;;  %746 = vst.msk [vmem:[#allocation3 + $0xef] sm:$0x1] %vm732_vm11, %v1587_v0  ;;  %747 = vst.msk [vmem:[#allocation3 + $0x10f] sm:$0x1] %vm732_vm11, %v1587_v0 }
  0x28   : > { %401 = vrot.lane.b32.xlu0 %v480_v60, %s1588_s12  ;;  %750 = vst.msk [vmem:[#allocation3 + $0x38] sm:$0x1] %vm732_vm11, %v1587_v0  ;;  %751 = vst.msk [vmem:[#allocation3 + $0x58] sm:$0x1] %vm732_vm11, %v1587_v0 }
  0x29   : > { %752 = vst.msk [vmem:[#allocation3 + $0x78] sm:$0x1] %vm732_vm11, %v1587_v0  ;;  %753 = vst.msk [vmem:[#allocation3 + $0x98] sm:$0x1] %vm732_vm11, %v1587_v0 }
  0x2a   : > { %754 = vst.msk [vmem:[#allocation3 + $0xb8] sm:$0x1] %vm732_vm11, %v1587_v0  ;;  %755 = vst.msk [vmem:[#allocation3 + $0xd8] sm:$0x1] %vm732_vm11, %v1587_v0 }
  0x2b   : > { %403 = vrot.lane.b32.xlu1 %v384_v62, %s1588_s12  ;;  %756 = vst.msk [vmem:[#allocation3 + $0xf8] sm:$0x1] %vm732_vm11, %v1587_v0  ;;  %757 = vst.msk [vmem:[#allocation3 + $0x118] sm:$0x1] %vm732_vm11, %v1587_v0 }
  0x2c   : > { %450 = vrot.lane.b32.xlu0 %v432_v55, %s1589_s29  ;;  %749 = vst.msk [vmem:[#allocation3 + $0x18] sm:$0x1] %vm732_vm11, %v1587_v0  ;;  %739 = vst.msk [vmem:[#allocation3 + $0xf] sm:$0x1] %vm732_vm11, %v1587_v0 }
  0x2d   : > { %748 = vst.msk [vmem:[#allocation3 + $0x12f] sm:$0x1] %vm732_vm11, %v1587_v0  ;;  %758 = vst.msk [vmem:[#allocation3 + $0x138] sm:$0x1] %vm732_vm11, %v1587_v0  ;;  %vm1261_vm11 = vcmask 1043456  }
  0x2f   : > { %452 = vrot.lane.b32.xlu1 %v433_v56, %s1589_s29 }
  0x30   : > { %499 = vrot.lane.b32.xlu0 %v384_v62, %s1590_s9 }
  0x33   : > { %501 = vrot.lane.b32.xlu1 %v482_v63, %s1590_s9  ;;  %v833_v13 = vld [vmem:[#allocation3 + $0x11] sm:$0xff] }
  0x34   : > { %405 = vrot.lane.b32.xlu0 %v482_v63, %s1588_s12  ;;  %v1037_v41 = vld [vmem:[#allocation3 + $0x12f] sm:$0xff] }
  0x35   : > { %v768_v43 = vld [vmem:[#allocation3 + $0xf] sm:$0xff] }
  0x36   : > { %776 = vst.msk [vmem:[#allocation5] sm:$0xff] %vm728_vm10, %v768_v43  ;;  %v1233_v43 = vld [vmem:[%s2136_s2 + $0x38] sm:$0xff] }
  0x37   : > { %407 = vrot.lane.b32.xlu1 %v386_v1, %s1588_s12 }
  0x38   : > { %454 = vrot.lane.b32.xlu0 %v434_v57, %s1589_s29 }
  0x3b   : > { %456 = vrot.lane.b32.xlu1 %v435_v58, %s1589_s29 }
  0x3c   : > { %503 = vrot.lane.b32.xlu0 %v386_v1, %s1590_s9 }
  0x3f   : > { %505 = vrot.lane.b32.xlu1 %v484_v2, %s1590_s9 }
  0x40   : > { %409 = vrot.lane.b32.xlu0 %v484_v2, %s1588_s12 }
  0x43   : > { %411 = vrot.lane.b32.xlu1 %v388_v6, %s1588_s12 }
  0x44   : > { %458 = vrot.lane.b32.xlu0 %v436_v61, %s1589_s29 }
  0x47   : > { %460 = vrot.lane.b32.xlu1 %v437_v7, %s1589_s29 }
  0x48   : > { %507 = vrot.lane.b32.xlu0 %v388_v6, %s1590_s9 }
  0x4b   : > { %509 = vrot.lane.b32.xlu1 %v486_v8, %s1590_s9 }
  0x4c   : > { %800 = vrot.lane.b32.xlu0 %v784_v12, %s1592_s11 }
  0x4f   : > { %1187 = vrot.lane.b32.xlu1 %v1673_v4, %s1591_s10 }
  0x50   : > { %849 = vrot.lane.b32.xlu0 %v833_v13, %s1588_s12 }
  0x53   : > { %1191 = vrot.lane.b32.xlu1 %v1680_v9, %s1591_s10 }
  0x54   : > { %1185 = vrot.lane.b32.xlu0 %v1671_v3, %s1591_s10 }
  0x57   : > { %1193 = vrot.lane.b32.xlu1 %v1682_v10, %s1591_s10 }
  0x58   : > { %1189 = vrot.lane.b32.xlu0 %v1675_v5, %s1591_s10 }
  0x5b   : > { %1060 = vrot.lane.b32.xlu1 %v1037_v41, %s1590_s9  ;;  %v1234_v41 = vld [vmem:[%s2136_s2 + $0x40] sm:$0xff] }
  0x5c   : > { %1195 = vrot.lane.b32.xlu0 %v1684_v11, %s1591_s10 }
  0x5f   : > { %1109 = vrot.lane.b32.xlu1 %v1086_v42, %s1593_s13 }
  0x86   : > { %v398_v0 = vpop.permute.xlu0 %397 }
  0x87   : > { %422 = vst.msk [vmem:[#allocation4] sm:$0xff] %vm421_vm12, %v398_v0 }
  0x91   : > { %v447_v4 = vpop.permute.xlu1 %446 }
  0x92   : > { %v400_v9 = vpop.permute.xlu0 %399  ;;  %471 = vst.msk [vmem:[#allocation4] sm:$0xff] %vm470_vm13, %v447_v4 }
  0x93   : > { %423 = vst.msk [vmem:[#allocation4 + $0x8] sm:$0xff] %vm421_vm12, %v400_v9 }
  0x95   : > { %v449_v10 = vpop.permute.xlu1 %448 }
  0x96   : > { %v496_v3 = vpop.permute.xlu0 %495  ;;  %472 = vst.msk [vmem:[#allocation4 + $0x8] sm:$0xff] %vm470_vm13, %v449_v10 }
  0x97   : > { %520 = vst.msk [vmem:[#allocation4] sm:$0xff] %vm519_vm14, %v496_v3 }
  0x99   : > { %v498_v5 = vpop.permute.xlu1 %497 }
  0x9a   : > { %v402_v11 = vpop.permute.xlu0 %401  ;;  %521 = vst.msk [vmem:[#allocation4 + $0x8] sm:$0xff] %vm519_vm14, %v498_v5 }
  0x9b   : > { %424 = vst.msk [vmem:[#allocation4 + $0x10] sm:$0xff] %vm421_vm12, %v402_v11 }
  0x9d   : > { %v404_v14 = vpop.permute.xlu1 %403 }
  0x9e   : > { %v451_v15 = vpop.permute.xlu0 %450  ;;  %v528_v18 = vld [vmem:[#allocation4] sm:$0xff]  ;;  %425 = vst.msk [vmem:[#allocation4 + $0x18] sm:$0xff] %vm421_vm12, %v404_v14 }
  0x9f   : > { %473 = vst.msk [vmem:[#allocation4 + $0x10] sm:$0xff] %vm470_vm13, %v451_v15  ;;  %1517 = vmatprep.mubr.msk.f32.mxu0 %vm544_vm15, %v528_v18 }
  0xa1   : > { %v453_v19 = vpop.permute.xlu1 %452  ;;  %v529_v20 = vld [vmem:[#allocation4 + $0x8] sm:$0xff] }
  0xa2   : > { %v500_v21 = vpop.permute.xlu0 %499  ;;  %474 = vst.msk [vmem:[#allocation4 + $0x18] sm:$0xff] %vm470_vm13, %v453_v19  ;;  %1518 = vmatmul.mubr.msk.f32.vlgmr.msra.gmra.mxu0 %vm544_vm15, %v529_v20 }
  0xa3   : > { %522 = vst.msk [vmem:[#allocation4 + $0x10] sm:$0xff] %vm519_vm14, %v500_v21 }
  0xa5   : > { %v502_v22 = vpop.permute.xlu1 %501 }
  0xa6   : > { %v406_v23 = vpop.permute.xlu0 %405  ;;  %523 = vst.msk [vmem:[#allocation4 + $0x18] sm:$0xff] %vm519_vm14, %v502_v22 }
  0xa7   : > { %426 = vst.msk [vmem:[#allocation4 + $0x20] sm:$0xff] %vm421_vm12, %v406_v23 }
  0xa9   : > { %v408_v25 = vpop.permute.xlu1 %407 }
  0xaa   : > { %v530_v24 = vld [vmem:[#allocation4 + $0x10] sm:$0xff]  ;;  %v455_v26 = vpop.permute.xlu0 %454  ;;  %427 = vst.msk [vmem:[#allocation4 + $0x28] sm:$0xff] %vm421_vm12, %v408_v25 }
  0xab   : > { %1520 = vmatprep.mubr.msk.f32.mxu0 %vm544_vm15, %v530_v24  ;;  %475 = vst.msk [vmem:[#allocation4 + $0x20] sm:$0xff] %vm470_vm13, %v455_v26 }
  0xad   : > { %v531_v27 = vld [vmem:[#allocation4 + $0x18] sm:$0xff]  ;;  %v457_v28 = vpop.permute.xlu1 %456 }
  0xae   : > { %v504_v29 = vpop.permute.xlu0 %503  ;;  %1521 = vmatmul.mubr.msk.f32.gmra.mxu0 %vm544_vm15, %v531_v27  ;;  %476 = vst.msk [vmem:[#allocation4 + $0x28] sm:$0xff] %vm470_vm13, %v457_v28 }
  0xaf   : > { %524 = vst.msk [vmem:[#allocation4 + $0x20] sm:$0xff] %vm519_vm14, %v504_v29 }
  0xb1   : > { %v506_v30 = vpop.permute.xlu1 %505 }
  0xb2   : > { %v410_v31 = vpop.permute.xlu0 %409  ;;  %525 = vst.msk [vmem:[#allocation4 + $0x28] sm:$0xff] %vm519_vm14, %v506_v30 }
  0xb3   : > { %428 = vst.msk [vmem:[#allocation4 + $0x30] sm:$0xff] %vm421_vm12, %v410_v31 }
  0xb5   : > { %v412_v33 = vpop.permute.xlu1 %411 }
  0xb6   : > { %v532_v32 = vld [vmem:[#allocation4 + $0x20] sm:$0xff]  ;;  %v459_v34 = vpop.permute.xlu0 %458  ;;  %429 = vst.msk [vmem:[#allocation4 + $0x38] sm:$0xff] %vm421_vm12, %v412_v33  ;;  %vm922_vm12 = vcmask 261312  }
  0xb7   : > { %1523 = vmatprep.mubr.msk.f32.mxu0 %vm544_vm15, %v532_v32  ;;  %477 = vst.msk [vmem:[#allocation4 + $0x30] sm:$0xff] %vm470_vm13, %v459_v34 }
  0xb9   : > { %v533_v35 = vld [vmem:[#allocation4 + $0x28] sm:$0xff]  ;;  %v461_v36 = vpop.permute.xlu1 %460 }
  0xba   : > { %v508_v37 = vpop.permute.xlu0 %507  ;;  %1524 = vmatmul.mubr.msk.f32.gmra.mxu0 %vm544_vm15, %v533_v35  ;;  %478 = vst.msk [vmem:[#allocation4 + $0x38] sm:$0xff] %vm470_vm13, %v461_v36  ;;  %vm971_vm13 = vcmask 326912  }
  0xbb   : > { %526 = vst.msk [vmem:[#allocation4 + $0x30] sm:$0xff] %vm519_vm14, %v508_v37 }
  0xbd   : > { %v510_v38 = vpop.permute.xlu1 %509 }
  0xbe   : > { %527 = vst.msk [vmem:[#allocation4 + $0x38] sm:$0xff] %vm519_vm14, %v510_v38  ;;  %v801_v44 = vpop.permute.xlu0 %800  ;;  %vm1020_vm14 = vcmask 392512  }
  0xbf   : > { %825 = vst.msk [vmem:[#allocation5] sm:$0xff] %vm824_vm0, %v801_v44  ;;  %v1232_v44 = vld [vmem:[%s2136_s2 + $0x30] sm:$0xff] }
  0xc2   : > { %v534_v39 = vld [vmem:[#allocation4 + $0x30] sm:$0xff]  ;;  %v850_v45 = vpop.permute.xlu0 %849 }
  0xc3   : > { %1526 = vmatprep.mubr.msk.f32.mxu0 %vm544_vm15, %v534_v39  ;;  %874 = vst.msk [vmem:[#allocation5] sm:$0xff] %vm873_vm1, %v850_v45  ;;  %v1235_v39 = vld [vmem:[%s2136_s2 + $0x48] sm:$0xf] }
  0xc4   : > { %1529 = vmatprep.subr.msk.mxu1 %vm1261_vm11, %v1235_v39  ;;  %v1231_v45 = vld [vmem:[%s2136_s2 + $0x28] sm:$0xff] }
  0xc5   : > { %v535_v40 = vld [vmem:[#allocation4 + $0x38] sm:$0xff]  ;;  %1530 = vmatpush3.msk.msra.mxu1 %vm1261_vm11, %v1235_v39 }
  0xc6   : > { %1527 = vmatmul.mubr.msk.f32.gmra.mxu0 %vm544_vm15, %v535_v40  ;;  %1531 = vmatprep.subr.mxu1 %v1234_v41  ;;  %vm1070_vm15 = vcmask 458112  }
  0xc7   : > { %1532 = vmatpush3.msra.mxu1 %v1234_v41 }
  0xc8   : > { %1533 = vmatprep.subr.mxu1 %v1233_v43 }
  0xc9   : > { %1534 = vmatpush3.msra.mxu1 %v1233_v43 }
  0xca   : > { %1535 = vmatprep.subr.mxu1 %v1232_v44 }
  0xcb   : > { %1536 = vmatpush3.msra.mxu1 %v1232_v44 }
  0xcc   : > { %1537 = vmatprep.subr.mxu1 %v1231_v45 }
  0xcd   : > { %1538 = vmatpush3.msra.mxu1 %v1231_v45 }
 0x162   : > { %v1519_v47 = vpop.f32.mrf.mxu0 }
 0x163   : > { %v682_v49 = vmul.f32 %v1519_v47, %v1865_v46  ;;  %v1229_v47 = vld [vmem:[%s2136_s2 + $0x18] sm:$0xff] }
 0x164   : > { %v635_v50 = vpop.f32.mrf.mxu0 }
 0x165   : > { %v697_v51 = vadd.f32 %v1870_v48, %v682_v49  ;;  %v681_v52 = vmul.f32 %v1865_v46, %v635_v50  ;;  %v1227_v49 = vld [vmem:[%s2136_s2 + $0x8] sm:$0xff] }
 0x167   : > { %vm705_vm2 = vcmp.gt.f32.partialorder %v697_v51, 0.0  ;;  %v713_v53 = vmul.f32 0.1, %v697_v51  ;;  %v696_v54 = vadd.f32 %v1870_v48, %v681_v52 }
 0x169   : > { %v721_v55 = vsel %vm705_vm2, %v697_v51, %v713_v53  ;;  %vm704_vm3 = vcmp.gt.f32.partialorder %v696_v54, 0.0  ;;  %v712_v56 = vmul.f32 0.1, %v696_v54  ;;  %v1226_v51 = vld [vmem:[%s2136_s2] sm:$0xff]  ;;  %vm1119_vm2 = vcmask 523712  }
 0x16a   : > { %761 = vst.msk [vmem:[#allocation3 + $0x50] sm:$0xff] %vm728_vm10, %v721_v55 }
 0x16b   : > { %v720_v57 = vsel %vm704_vm3, %v696_v54, %v712_v56  ;;  %v1995_v56 = vpop.permute.xlu1 %1187  ;;  %vm1168_vm3 = vcmask 589312  }
 0x16c   : > { %760 = vst.msk [vmem:[#allocation3 + $0x30] sm:$0xff] %vm728_vm10, %v720_v57 }
 0x16e   : > { %v1522_v58 = vpop.f32.mrf.mxu0 }
 0x16f   : > { %v684_v59 = vmul.f32 %v1522_v58, %v1865_v46  ;;  %v1999_v58 = vpop.permute.xlu1 %1191 }
 0x170   : > { %v645_v60 = vpop.f32.mrf.mxu0 }
 0x171   : > { %v699_v61 = vadd.f32 %v1870_v48, %v684_v59  ;;  %v683_v62 = vmul.f32 %v1865_v46, %v645_v60  ;;  %v932_v63 = vld [vmem:[#allocation3 + $0x50] sm:$0xff] }
 0x172   : > { %v883_v1 = vld [vmem:[#allocation3 + $0x4f] sm:$0xff]  ;;  %949 = vrot.lane.b32.xlu0 %v932_v63, %s1589_s29 }
 0x173   : > { %900 = vrot.lane.b32.xlu1 %v883_v1, %s1594_s18  ;;  %778 = vst.msk [vmem:[#allocation5 + $0x10] sm:$0xff] %vm728_vm10, %v883_v1  ;;  %vm707_vm4 = vcmp.gt.f32.partialorder %v699_v61, 0.0  ;;  %v715_v2 = vmul.f32 0.1, %v699_v61  ;;  %v698_v6 = vadd.f32 %v1870_v48, %v683_v62  ;;  %v882_v7 = vld [vmem:[#allocation3 + $0x2f] sm:$0xff]  ;;  %v2005_v60 = vpop.permute.xlu1 %1193 }
 0x174   : > { %777 = vst.msk [vmem:[#allocation5 + $0x8] sm:$0xff] %vm728_vm10, %v882_v7  ;;  %v981_v13 = vld [vmem:[#allocation3 + $0x51] sm:$0xff] }
 0x175   : > { %v723_v8 = vsel %vm707_vm4, %v699_v61, %v715_v2  ;;  %vm706_vm5 = vcmp.gt.f32.partialorder %v698_v6, 0.0  ;;  %v714_v12 = vmul.f32 0.1, %v698_v6  ;;  %v931_v3 = vld [vmem:[#allocation3 + $0x30] sm:$0xff]  ;;  %v2007_v61 = vpop.permute.xlu0 %1185  ;;  %vm1209_vm4 = vcmask 622144  }
 0x176   : > { %763 = vst.msk [vmem:[#allocation3 + $0x90] sm:$0xff] %vm728_vm10, %v723_v8  ;;  %998 = vrot.lane.b32.xlu0 %v981_v13, %s1595_s19  ;;  %v834_v34 = vld [vmem:[#allocation3 + $0x31] sm:$0xff] }
 0x177   : > { %804 = vrot.lane.b32.xlu1 %v932_v63, %s1592_s11  ;;  %v722_v0 = vsel %vm706_vm5, %v698_v6, %v714_v12  ;;  %v1135_v8 = vld [vmem:[#allocation3 + $0x131] sm:$0xff]  ;;  %vm1236_vm5 = vcmask 621568  }
 0x178   : > { %762 = vst.msk [vmem:[#allocation3 + $0x70] sm:$0xff] %vm728_vm10, %v722_v0 }
 0x17a   : > { %898 = vrot.lane.b32.xlu0 %v882_v7, %s1594_s18  ;;  %v1525_v4 = vpop.f32.mrf.mxu0 }
 0x17b   : > { %853 = vrot.lane.b32.xlu1 %v981_v13, %s1588_s12  ;;  %v686_v9 = vmul.f32 %v1525_v4, %v1865_v46 }
 0x17c   : > { %v655_v10 = vpop.f32.mrf.mxu0 }
 0x17d   : > { %v885_v5 = vld [vmem:[#allocation3 + $0x8f] sm:$0xff]  ;;  %v701_v11 = vadd.f32 %v1870_v48, %v686_v9  ;;  %v685_v14 = vmul.f32 %v1865_v46, %v655_v10 }
 0x17e   : > { %947 = vrot.lane.b32.xlu0 %v931_v3, %s1589_s29  ;;  %780 = vst.msk [vmem:[#allocation5 + $0x20] sm:$0xff] %vm728_vm10, %v885_v5  ;;  %v788_v23 = vld [vmem:[#allocation3 + $0x90] sm:$0xff] }
 0x17f   : > { %1046 = vrot.lane.b32.xlu1 %v883_v1, %s1590_s9  ;;  %vm709_vm6 = vcmp.gt.f32.partialorder %v701_v11, 0.0  ;;  %v717_v15 = vmul.f32 0.1, %v701_v11  ;;  %v700_v18 = vadd.f32 %v1870_v48, %v685_v14  ;;  %v1899_v19 = vld [vmem:[#allocation3 + $0x6f] sm:$0xff]  ;;  %v2013_v1 = vpop.permute.xlu0 %1189 }
 0x180   : > { %779 = vst.msk [vmem:[#allocation5 + $0x18] sm:$0xff] %vm728_vm10, %v1899_v19  ;;  %v837_v27 = vld [vmem:[#allocation3 + $0x91] sm:$0xff] }
 0x181   : > { %v725_v20 = vsel %vm709_vm6, %v701_v11, %v717_v15  ;;  %vm708_vm7 = vcmp.gt.f32.partialorder %v700_v18, 0.0  ;;  %v716_v21 = vmul.f32 0.1, %v700_v18  ;;  %v787_v38 = vld [vmem:[#allocation3 + $0x70] sm:$0xff] }
 0x182   : > { %904 = vrot.lane.b32.xlu0 %v885_v5, %s1594_s18  ;;  %765 = vst.msk [vmem:[#allocation3 + $0xd0] sm:$0xff] %vm728_vm10, %v725_v20  ;;  %v836_v40 = vld [vmem:[#allocation3 + $0x71] sm:$0xff] }
 0x183   : > { %1095 = vrot.lane.b32.xlu1 %v932_v63, %s1593_s13  ;;  %v724_v22 = vsel %vm708_vm7, %v700_v18, %v716_v21  ;;  %v2011_v63 = vpop.permute.xlu1 %1060  ;;  %v2023_v7 = vpop.permute.xlu0 %1195 }
 0x184   : > { %764 = vst.msk [vmem:[#allocation3 + $0xb0] sm:$0xff] %vm728_vm10, %v724_v22 }
 0x186   : > { %808 = vrot.lane.b32.xlu0 %v788_v23, %s1592_s11  ;;  %v1528_v24 = vpop.f32.mrf.mxu0 }
 0x187   : > { %1144 = vrot.lane.b32.xlu1 %v981_v13, %s1596_s20  ;;  %v688_v25 = vmul.f32 %v1528_v24, %v1865_v46  ;;  %v2021_v6 = vpop.permute.xlu1 %1109 }
 0x188   : > { %v665_v26 = vpop.f32.mrf.mxu0 }
 0x189   : > { %v1910_v28 = vld [vmem:[#allocation3 + $0xcf] sm:$0xff]  ;;  %v703_v29 = vadd.f32 %v1870_v48, %v688_v25  ;;  %v687_v30 = vmul.f32 %v1865_v46, %v665_v26 }
 0x18a   : > { %857 = vrot.lane.b32.xlu0 %v837_v27, %s1588_s12  ;;  %782 = vst.msk [vmem:[#allocation5 + $0x30] sm:$0xff] %vm728_vm10, %v1910_v28  ;;  %v1230_v46 = vld [vmem:[%s2136_s2 + $0x20] sm:$0xff]  ;;  %v790_v50 = vld [vmem:[#allocation3 + $0xd0] sm:$0xff] }
 0x18b   : > { %802 = vrot.lane.b32.xlu1 %v931_v3, %s1592_s11  ;;  %vm711_vm8 = vcmp.gt.f32.partialorder %v703_v29, 0.0  ;;  %v719_v31 = vmul.f32 0.1, %v703_v29  ;;  %v702_v32 = vadd.f32 %v1870_v48, %v687_v30  ;;  %v1919_v33 = vld [vmem:[#allocation3 + $0xaf] sm:$0xff]  ;;  %1539 = vmatprep.subr.mxu1 %v1230_v46  ;;  %v1228_v48 = vld [vmem:[%s2136_s2 + $0x10] sm:$0xff] }
 0x18c   : > { %781 = vst.msk [vmem:[#allocation5 + $0x28] sm:$0xff] %vm728_vm10, %v1919_v33  ;;  %1540 = vmatpush3.msra.mxu1 %v1230_v46  ;;  %v839_v52 = vld [vmem:[#allocation3 + $0xd1] sm:$0xff] }
 0x18d   : > { %v727_v35 = vsel %vm711_vm8, %v703_v29, %v719_v31  ;;  %vm710_vm9 = vcmp.gt.f32.partialorder %v702_v32, 0.0  ;;  %v718_v36 = vmul.f32 0.1, %v702_v32  ;;  %1541 = vmatprep.subr.mxu1 %v1229_v47  ;;  %v838_v53 = vld [vmem:[#allocation3 + $0xb1] sm:$0xff] }
 0x18e   : > { %1050 = vrot.lane.b32.xlu0 %v885_v5, %s1590_s9  ;;  %767 = vst.msk [vmem:[#allocation3 + $0x110] sm:$0xff] %vm728_vm10, %v727_v35  ;;  %1542 = vmatpush3.msra.mxu1 %v1229_v47  ;;  %v1082_v54 = vld [vmem:[#allocation3 + $0xb0] sm:$0xff] }
 0x18f   : > { %851 = vrot.lane.b32.xlu1 %v834_v34, %s1588_s12  ;;  %v726_v37 = vsel %vm710_vm9, %v702_v32, %v718_v36  ;;  %1543 = vmatprep.subr.mxu1 %v1228_v48 }
 0x190   : > { %766 = vst.msk [vmem:[#allocation3 + $0xf0] sm:$0xff] %vm728_vm10, %v726_v37  ;;  %1544 = vmatpush3.msra.mxu1 %v1228_v48 }
 0x191   : > { %1545 = vmatprep.subr.mxu1 %v1227_v49 }
 0x192   : > { %806 = vrot.lane.b32.xlu0 %v787_v38, %s1592_s11  ;;  %1546 = vmatpush3.msra.mxu1 %v1227_v49 }
 0x193   : > { %996 = vrot.lane.b32.xlu1 %v834_v34, %s1595_s19  ;;  %1547 = vmatprep.subr.mxu1 %v1226_v51 }
 0x194   : > { %1548 = vmatpush3.msra.mxu1 %v1226_v51 }
 0x195   : > { %v889_v55 = vld [vmem:[#allocation3 + $0x10f] sm:$0xff] }
 0x196   : > { %855 = vrot.lane.b32.xlu0 %v836_v40, %s1588_s12  ;;  %v938_v57 = vld [vmem:[#allocation3 + $0x110] sm:$0xff] }
 0x197   : > { %953 = vrot.lane.b32.xlu1 %v788_v23, %s1589_s29  ;;  %v1937_v42 = vld [vmem:[#allocation3 + $0xef] sm:$0xff] }
 0x198   : > { %783 = vst.msk [vmem:[#allocation5 + $0x38] sm:$0xff] %vm728_vm10, %v1937_v42  ;;  %v987_v59 = vld [vmem:[#allocation3 + $0x111] sm:$0xff] }
 0x199   : > { %v791_v62 = vld [vmem:[#allocation3 + $0xf0] sm:$0xff] }
 0x19a   : > { %1048 = vrot.lane.b32.xlu0 %v1899_v19, %s1590_s9  ;;  %v840_v2 = vld [vmem:[#allocation3 + $0xf1] sm:$0xff] }
 0x19b   : > { %1002 = vrot.lane.b32.xlu1 %v837_v27, %s1595_s19 }
 0x19e   : > { %1097 = vrot.lane.b32.xlu0 %v787_v38, %s1593_s13 }
 0x19f   : > { %1099 = vrot.lane.b32.xlu1 %v788_v23, %s1593_s13 }
 0x1a2   : > { %1000 = vrot.lane.b32.xlu0 %v836_v40, %s1595_s19 }
 0x1a3   : > { %1148 = vrot.lane.b32.xlu1 %v837_v27, %s1596_s20 }
 0x1a6   : > { %908 = vrot.lane.b32.xlu0 %v1910_v28, %s1594_s18 }
 0x1a7   : > { %902 = vrot.lane.b32.xlu1 %v1899_v19, %s1594_s18 }
 0x1aa   : > { %812 = vrot.lane.b32.xlu0 %v790_v50, %s1592_s11 }
 0x1ab   : > { %951 = vrot.lane.b32.xlu1 %v787_v38, %s1589_s29 }
 0x1ae   : > { %861 = vrot.lane.b32.xlu0 %v839_v52, %s1588_s12 }
 0x1af   : > { %1146 = vrot.lane.b32.xlu1 %v836_v40, %s1596_s20 }
 0x1b2   : > { %1054 = vrot.lane.b32.xlu0 %v1910_v28, %s1590_s9 }
 0x1b3   : > { %957 = vrot.lane.b32.xlu1 %v790_v50, %s1589_s29 }
 0x1b6   : > { %859 = vrot.lane.b32.xlu0 %v838_v53, %s1588_s12 }
 0x1b7   : > { %1006 = vrot.lane.b32.xlu1 %v839_v52, %s1595_s19 }
 0x1ba   : > { %1052 = vrot.lane.b32.xlu0 %v1919_v33, %s1590_s9 }
 0x1bb   : > { %1103 = vrot.lane.b32.xlu1 %v790_v50, %s1593_s13 }
 0x1be   : > { %1101 = vrot.lane.b32.xlu0 %v1082_v54, %s1593_s13 }
 0x1bf   : > { %1152 = vrot.lane.b32.xlu1 %v839_v52, %s1596_s20 }
 0x1c2   : > { %1004 = vrot.lane.b32.xlu0 %v838_v53, %s1595_s19 }
 0x1c3   : > { %810 = vrot.lane.b32.xlu1 %v1082_v54, %s1592_s11 }
 0x1c6   : > { %912 = vrot.lane.b32.xlu0 %v889_v55, %s1594_s18 }
 0x1c7   : > { %906 = vrot.lane.b32.xlu1 %v1919_v33, %s1594_s18 }
 0x1ca   : > { %961 = vrot.lane.b32.xlu0 %v938_v57, %s1589_s29 }
 0x1cb   : > { %955 = vrot.lane.b32.xlu1 %v1082_v54, %s1589_s29 }
 0x1ce   : > { %1010 = vrot.lane.b32.xlu0 %v987_v59, %s1595_s19 }
 0x1cf   : > { %1150 = vrot.lane.b32.xlu1 %v838_v53, %s1596_s20 }
 0x1d2   : > { %1107 = vrot.lane.b32.xlu0 %v938_v57, %s1593_s13 }
 0x1d3   : > { %1058 = vrot.lane.b32.xlu1 %v889_v55, %s1590_s9 }
 0x1d6   : > { %1156 = vrot.lane.b32.xlu0 %v987_v59, %s1596_s20 }
 0x1d7   : > { %814 = vrot.lane.b32.xlu1 %v791_v62, %s1592_s11 }
 0x1da   : > { %863 = vrot.lane.b32.xlu0 %v840_v2, %s1588_s12  ;;  %s1441_s12 = sshll.u32 %s1643_s25, 3 }
 0x1db   : > { %910 = vrot.lane.b32.xlu1 %v1937_v42, %s1594_s18  ;;  %p275_p4 = scmp.lt.s32.totalorder %s1441_s12, 15 }
 0x1dd   : > { %s2143_s12 = smov (!%p275_p4, %s1441_s12), 15 }
 0x1de   : > { %1056 = vrot.lane.b32.xlu0 %v1937_v42, %s1590_s9 }
 0x1df   : > { %959 = vrot.lane.b32.xlu1 %v791_v62, %s1589_s29  ;;  %s1442_s29 = sshll.u32 %s2143_s12, 3 }
 0x1e0   : > { %s278_s11 = scalar_lea.vmem %s2141_s7, %s1442_s29 }
 0x1e2   : > { %1105 = vrot.lane.b32.xlu0 %v791_v62, %s1593_s13 }
 0x1e3   : > { %1008 = vrot.lane.b32.xlu1 %v840_v2, %s1595_s19 }
 0x1e4   : > { %v950_v12 = vpop.permute.xlu0 %949 }
 0x1e5   : > { %v901_v13 = vpop.permute.xlu1 %900 }
 0x1e6   : > { %1154 = vrot.lane.b32.xlu0 %v840_v2, %s1596_s20 }
 0x1e7   : > { %1158 = vrot.lane.b32.xlu1 %v1135_v8, %s1596_s20 }
 0x1e8   : > { %v999_v0 = vpop.permute.xlu0 %998 }
 0x1e9   : > { %v805_v4 = vpop.permute.xlu1 %804 }
 0x1ea   : > { %827 = vst.msk [vmem:[#allocation5 + $0x10] sm:$0xff] %vm824_vm0, %v805_v4  ;;  %1197 = vrot.lane.b32.xlu0 %v1689_v16, %s1591_s10 }
 0x1eb   : > { %1199 = vrot.lane.b32.xlu1 %v1691_v17, %s1591_s10 }
 0x1ec   : > { %v899_v10 = vpop.permute.xlu0 %898 }
 0x1ed   : > { %v854_v9 = vpop.permute.xlu1 %853  ;;  %923 = vst.msk [vmem:[#allocation5] sm:$0xff] %vm922_vm12, %v899_v10 }
 0x1ee   : > { %876 = vst.msk [vmem:[#allocation5 + $0x10] sm:$0xff] %vm873_vm1, %v854_v9 }
 0x1f0   : > { %v948_v5 = vpop.permute.xlu0 %947 }
 0x1f1   : > { %v1047_v3 = vpop.permute.xlu1 %1046  ;;  %972 = vst.msk [vmem:[#allocation5] sm:$0xff] %vm971_vm13, %v948_v5 }
 0x1f4   : > { %v905_v14 = vpop.permute.xlu0 %904 }
 0x1f5   : > { %v1096_v11 = vpop.permute.xlu1 %1095 }
 0x1f8   : > { %v809_v18 = vpop.permute.xlu0 %808 }
 0x1f9   : > { %v1145_v15 = vpop.permute.xlu1 %1144  ;;  %829 = vst.msk [vmem:[#allocation5 + $0x20] sm:$0xff] %vm824_vm0, %v809_v18 }
 0x1fc   : > { %v858_v17 = vpop.permute.xlu0 %857 }
 0x1fd   : > { %v803_v16 = vpop.permute.xlu1 %802  ;;  %878 = vst.msk [vmem:[#allocation5 + $0x20] sm:$0xff] %vm873_vm1, %v858_v17 }
 0x1fe   : > { %826 = vst.msk [vmem:[#allocation5 + $0x8] sm:$0xff] %vm824_vm0, %v803_v16 }
 0x200   : > { %v1051_v20 = vpop.permute.xlu0 %1050 }
 0x201   : > { %v852_v19 = vpop.permute.xlu1 %851 }
 0x202   : > { %875 = vst.msk [vmem:[#allocation5 + $0x8] sm:$0xff] %vm873_vm1, %v852_v19 }
 0x203   : > { %924 = vst.msk [vmem:[#allocation5 + $0x8] sm:$0xff] %vm922_vm12, %v901_v13 }
 0x204   : > { %973 = vst.msk [vmem:[#allocation5 + $0x8] sm:$0xff] %vm971_vm13, %v950_v12  ;;  %v807_v22 = vpop.permute.xlu0 %806 }
 0x205   : > { %v997_v21 = vpop.permute.xlu1 %996  ;;  %1022 = vst.msk [vmem:[#allocation5 + $0x8] sm:$0xff] %vm1020_vm14, %v999_v0 }
 0x206   : > { %1021 = vst.msk [vmem:[#allocation5] sm:$0xff] %vm1020_vm14, %v997_v21 }
 0x207   : > { %828 = vst.msk [vmem:[#allocation5 + $0x18] sm:$0xff] %vm824_vm0, %v807_v22 }
 0x208   : > { %1071 = vst.msk [vmem:[#allocation5] sm:$0xff] %vm1070_vm15, %v1047_v3  ;;  %v856_v24 = vpop.permute.xlu0 %855 }
 0x209   : > { %1120 = vst.msk [vmem:[#allocation5] sm:$0xff] %vm1119_vm2, %v1096_v11  ;;  %v954_v23 = vpop.permute.xlu1 %953 }
 0x20a   : > { %1169 = vst.msk [vmem:[#allocation5] sm:$0xff] %vm1168_vm3, %v1145_v15 }
 0x20b   : > { %1210 = vst.msk [vmem:[#allocation5] sm:$0xff] %vm1209_vm4, %v2007_v61 }
 0x20c   : > { %877 = vst.msk [vmem:[#allocation5 + $0x18] sm:$0xff] %vm873_vm1, %v856_v24  ;;  %v1049_v26 = vpop.permute.xlu0 %1048 }
 0x20d   : > { %926 = vst.msk [vmem:[#allocation5 + $0x18] sm:$0xff] %vm922_vm12, %v905_v14  ;;  %v1003_v25 = vpop.permute.xlu1 %1002 }
 0x20e   : > { %975 = vst.msk [vmem:[#allocation5 + $0x18] sm:$0xff] %vm971_vm13, %v954_v23 }
 0x20f   : > { %1024 = vst.msk [vmem:[#allocation5 + $0x18] sm:$0xff] %vm1020_vm14, %v1003_v25 }
 0x210   : > { %1072 = vst.msk [vmem:[#allocation5 + $0x8] sm:$0xff] %vm1070_vm15, %v1049_v26  ;;  %v1098_v28 = vpop.permute.xlu0 %1097 }
 0x211   : > { %v1100_v27 = vpop.permute.xlu1 %1099  ;;  %1121 = vst.msk [vmem:[#allocation5 + $0x8] sm:$0xff] %vm1119_vm2, %v1098_v28 }
 0x212   : > { %v1218_v29 = vld [vmem:[#allocation5] sm:$0xff] }
 0x213   : > { %1549 = vmatprep.mubr.msk.f32.mxu1 %vm1236_vm5, %v1218_v29 }
 0x214   : > { %v1001_v31 = vpop.permute.xlu0 %1000 }
 0x215   : > { %v1149_v30 = vpop.permute.xlu1 %1148 }
 0x218   : > { %v909_v33 = vpop.permute.xlu0 %908 }
 0x219   : > { %v903_v32 = vpop.permute.xlu1 %902 }
 0x21a   : > { %925 = vst.msk [vmem:[#allocation5 + $0x10] sm:$0xff] %vm922_vm12, %v903_v32 }
 0x21c   : > { %v813_v35 = vpop.permute.xlu0 %812 }
 0x21d   : > { %v952_v34 = vpop.permute.xlu1 %951  ;;  %831 = vst.msk [vmem:[#allocation5 + $0x30] sm:$0xff] %vm824_vm0, %v813_v35 }
 0x21e   : > { %974 = vst.msk [vmem:[#allocation5 + $0x10] sm:$0xff] %vm971_vm13, %v952_v34 }
 0x21f   : > { %1023 = vst.msk [vmem:[#allocation5 + $0x10] sm:$0xff] %vm1020_vm14, %v1001_v31 }
 0x220   : > { %1073 = vst.msk [vmem:[#allocation5 + $0x10] sm:$0xff] %vm1070_vm15, %v1051_v20  ;;  %v862_v37 = vpop.permute.xlu0 %861 }
 0x221   : > { %1122 = vst.msk [vmem:[#allocation5 + $0x10] sm:$0xff] %vm1119_vm2, %v1100_v27  ;;  %v1147_v36 = vpop.permute.xlu1 %1146 }
 0x222   : > { %1171 = vst.msk [vmem:[#allocation5 + $0x10] sm:$0xff] %vm1168_vm3, %v1149_v30  ;;  %1170 = vst.msk [vmem:[#allocation5 + $0x8] sm:$0xff] %vm1168_vm3, %v1147_v36 }
 0x223   : > { %880 = vst.msk [vmem:[#allocation5 + $0x30] sm:$0xff] %vm873_vm1, %v862_v37 }
 0x224   : > { %1212 = vst.msk [vmem:[#allocation5 + $0x10] sm:$0xff] %vm1209_vm4, %v2013_v1  ;;  %1211 = vst.msk [vmem:[#allocation5 + $0x8] sm:$0xff] %vm1209_vm4, %v1995_v56  ;;  %v1055_v39 = vpop.permute.xlu0 %1054 }
 0x225   : > { %v958_v38 = vpop.permute.xlu1 %957 }
 0x228   : > { %v860_v41 = vpop.permute.xlu0 %859 }
 0x229   : > { %v1007_v40 = vpop.permute.xlu1 %1006 }
 0x22b   : > { %v1219_v42 = vld [vmem:[#allocation5 + $0x8] sm:$0xff]  ;;  %v1220_v43 = vld [vmem:[#allocation5 + $0x10] sm:$0xff] }
 0x22c   : > { %1550 = vmatmul.mubr.msk.f32.vlgmr.msra.gmra.mxu1 %vm1236_vm5, %v1219_v42  ;;  %v1053_v45 = vpop.permute.xlu0 %1052 }
 0x22d   : > { %1552 = vmatprep.mubr.msk.f32.mxu1 %vm1236_vm5, %v1220_v43  ;;  %v1104_v44 = vpop.permute.xlu1 %1103  ;;  %1074 = vst.msk [vmem:[#allocation5 + $0x18] sm:$0xff] %vm1070_vm15, %v1053_v45 }
 0x230   : > { %v1102_v47 = vpop.permute.xlu0 %1101 }
 0x231   : > { %v1153_v46 = vpop.permute.xlu1 %1152  ;;  %1123 = vst.msk [vmem:[#allocation5 + $0x18] sm:$0xff] %vm1119_vm2, %v1102_v47 }
 0x234   : > { %v1005_v48 = vpop.permute.xlu0 %1004 }
 0x235   : > { %v811_v49 = vpop.permute.xlu1 %810 }
 0x236   : > { %830 = vst.msk [vmem:[#allocation5 + $0x28] sm:$0xff] %vm824_vm0, %v811_v49 }
 0x237   : > { %879 = vst.msk [vmem:[#allocation5 + $0x28] sm:$0xff] %vm873_vm1, %v860_v41 }
 0x238   : > { %928 = vst.msk [vmem:[#allocation5 + $0x28] sm:$0xff] %vm922_vm12, %v909_v33  ;;  %v913_v51 = vpop.permute.xlu0 %912 }
 0x239   : > { %977 = vst.msk [vmem:[#allocation5 + $0x28] sm:$0xff] %vm971_vm13, %v958_v38  ;;  %v907_v50 = vpop.permute.xlu1 %906 }
 0x23a   : > { %927 = vst.msk [vmem:[#allocation5 + $0x20] sm:$0xff] %vm922_vm12, %v907_v50 }
 0x23b   : > { %1026 = vst.msk [vmem:[#allocation5 + $0x28] sm:$0xff] %vm1020_vm14, %v1007_v40 }
 0x23c   : > { %v962_v53 = vpop.permute.xlu0 %961 }
 0x23d   : > { %v956_v52 = vpop.permute.xlu1 %955 }
 0x23e   : > { %976 = vst.msk [vmem:[#allocation5 + $0x20] sm:$0xff] %vm971_vm13, %v956_v52 }
 0x23f   : > { %1025 = vst.msk [vmem:[#allocation5 + $0x20] sm:$0xff] %vm1020_vm14, %v1005_v48 }
 0x240   : > { %1075 = vst.msk [vmem:[#allocation5 + $0x20] sm:$0xff] %vm1070_vm15, %v1055_v39  ;;  %v1011_v55 = vpop.permute.xlu0 %1010 }
 0x241   : > { %1124 = vst.msk [vmem:[#allocation5 + $0x20] sm:$0xff] %vm1119_vm2, %v1104_v44  ;;  %v1151_v54 = vpop.permute.xlu1 %1150 }
 0x242   : > { %1173 = vst.msk [vmem:[#allocation5 + $0x20] sm:$0xff] %vm1168_vm3, %v1153_v46  ;;  %1172 = vst.msk [vmem:[#allocation5 + $0x18] sm:$0xff] %vm1168_vm3, %v1151_v54 }
 0x243   : > { %1214 = vst.msk [vmem:[#allocation5 + $0x20] sm:$0xff] %vm1209_vm4, %v2005_v60  ;;  %1213 = vst.msk [vmem:[#allocation5 + $0x18] sm:$0xff] %vm1209_vm4, %v1999_v58 }
 0x244   : > { %v1108_v57 = vpop.permute.xlu0 %1107 }
 0x245   : > { %v1059_v56 = vpop.permute.xlu1 %1058 }
 0x248   : > { %v1157_v59 = vpop.permute.xlu0 %1156 }
 0x249   : > { %v815_v61 = vpop.permute.xlu1 %814 }
 0x24a   : > { %832 = vst.msk [vmem:[#allocation5 + $0x38] sm:$0xff] %vm824_vm0, %v815_v61  ;;  %v1221_v62 = vld [vmem:[#allocation5 + $0x18] sm:$0xff]  ;;  %v1222_v1 = vld [vmem:[#allocation5 + $0x20] sm:$0xff] }
 0x24b   : > { %1553 = vmatmul.mubr.msk.f32.gmra.mxu1 %vm1236_vm5, %v1221_v62 }
 0x24c   : > { %1555 = vmatprep.mubr.msk.f32.mxu1 %vm1236_vm5, %v1222_v1  ;;  %v864_v2 = vpop.permute.xlu0 %863 }
 0x24d   : > { %v911_v8 = vpop.permute.xlu1 %910  ;;  %881 = vst.msk [vmem:[#allocation5 + $0x38] sm:$0xff] %vm873_vm1, %v864_v2 }
 0x24e   : > { %929 = vst.msk [vmem:[#allocation5 + $0x30] sm:$0xff] %vm922_vm12, %v911_v8  ;;  %930 = vst.msk [vmem:[#allocation5 + $0x38] sm:$0xff] %vm922_vm12, %v913_v51 }
 0x24f   : > { %979 = vst.msk [vmem:[#allocation5 + $0x38] sm:$0xff] %vm971_vm13, %v962_v53 }
 0x250   : > { %1028 = vst.msk [vmem:[#allocation5 + $0x38] sm:$0xff] %vm1020_vm14, %v1011_v55  ;;  %v1057_v58 = vpop.permute.xlu0 %1056 }
 0x251   : > { %v960_v60 = vpop.permute.xlu1 %959  ;;  %1078 = vst.msk [vmem:[#allocation5 + $0x38] sm:$0xff] %vm1070_vm15, %v2011_v63  ;;  %1076 = vst.msk [vmem:[#allocation5 + $0x28] sm:$0xff] %vm1070_vm15, %v1057_v58 }
 0x252   : > { %978 = vst.msk [vmem:[#allocation5 + $0x30] sm:$0xff] %vm971_vm13, %v960_v60 }
 0x253   : > { %1127 = vst.msk [vmem:[#allocation5 + $0x38] sm:$0xff] %vm1119_vm2, %v2021_v6 }
 0x254   : > { %v1106_v12 = vpop.permute.xlu0 %1105 }
 0x255   : > { %v1009_v13 = vpop.permute.xlu1 %1008  ;;  %1125 = vst.msk [vmem:[#allocation5 + $0x28] sm:$0xff] %vm1119_vm2, %v1106_v12 }
 0x256   : > { %1027 = vst.msk [vmem:[#allocation5 + $0x30] sm:$0xff] %vm1020_vm14, %v1009_v13 }
 0x257   : > { %1077 = vst.msk [vmem:[#allocation5 + $0x30] sm:$0xff] %vm1070_vm15, %v1059_v56 }
 0x258   : > { %1126 = vst.msk [vmem:[#allocation5 + $0x30] sm:$0xff] %vm1119_vm2, %v1108_v57  ;;  %v1155_v0 = vpop.permute.xlu0 %1154 }
 0x259   : > { %1175 = vst.msk [vmem:[#allocation5 + $0x30] sm:$0xff] %vm1168_vm3, %v1157_v59  ;;  %v1159_v63 = vpop.permute.xlu1 %1158  ;;  %1174 = vst.msk [vmem:[#allocation5 + $0x28] sm:$0xff] %vm1168_vm3, %v1155_v0 }
 0x25a   : > { %1176 = vst.msk [vmem:[#allocation5 + $0x38] sm:$0xff] %vm1168_vm3, %v1159_v63 }
 0x25b   : > { %1215 = vst.msk [vmem:[#allocation5 + $0x28] sm:$0xff] %vm1209_vm4, %v2023_v7 }
 0x25c   : > { %v1198_v6 = vpop.permute.xlu0 %1197 }
 0x25d   : > { %v1200_v4 = vpop.permute.xlu1 %1199  ;;  %1216 = vst.msk [vmem:[#allocation5 + $0x30] sm:$0xff] %vm1209_vm4, %v1198_v6 }
 0x25e   : > { %1217 = vst.msk [vmem:[#allocation5 + $0x38] sm:$0xff] %vm1209_vm4, %v1200_v4 }
 0x262   : > { %v1223_v9 = vld [vmem:[#allocation5 + $0x28] sm:$0xff] }
 0x263   : > { %1556 = vmatmul.mubr.msk.f32.gmra.mxu1 %vm1236_vm5, %v1223_v9 }
 0x264   : > { %v1224_v10 = vld [vmem:[#allocation5 + $0x30] sm:$0xff] }
 0x265   : > { %v1225_v3 = vld [vmem:[#allocation5 + $0x38] sm:$0xff]  ;;  %1558 = vmatprep.mubr.msk.f32.mxu1 %vm1236_vm5, %v1224_v10 }
 0x267   : > { %1559 = vmatmul.mubr.msk.f32.gmra.mxu1 %vm1236_vm5, %v1225_v3 }
 0x2ec   : > { %v1551_v7 = vpop.f32.mrf.mxu1 }
 0x2ed   : > { %1371 = vst.msk [vmem:[%s278_s11 + $0x8] sm:$0xff] %vm728_vm10, %v1551_v7 }
 0x2ee   : > { %v1331_v5 = vpop.f32.mrf.mxu1 }
 0x2ef   : > { %1370 = vst.msk [vmem:[%s278_s11] sm:$0xff] %vm728_vm10, %v1331_v5 }
 0x30b   : > { %v1554_v11 = vpop.f32.mrf.mxu1 }
 0x30c   : > { %1373 = vst.msk [vmem:[%s278_s11 + $0x18] sm:$0xff] %vm728_vm10, %v1554_v11 }
 0x30d   : > { %v1341_v14 = vpop.f32.mrf.mxu1 }
 0x30e   : > { %1372 = vst.msk [vmem:[%s278_s11 + $0x10] sm:$0xff] %vm728_vm10, %v1341_v14 }
 0x323   : > { %v1557_v15 = vpop.f32.mrf.mxu1 }
 0x324   : > { %1375 = vst.msk [vmem:[%s278_s11 + $0x28] sm:$0xff] %vm728_vm10, %v1557_v15 }
 0x325   : > { %v1351_v18 = vpop.f32.mrf.mxu1 }
 0x326   : > { %1374 = vst.msk [vmem:[%s278_s11 + $0x20] sm:$0xff] %vm728_vm10, %v1351_v18 }
 0x327   : > { %v1560_v16 = vpop.f32.mrf.mxu1 }
 0x328   : > { %1377 = vst.msk [vmem:[%s278_s11 + $0x38] sm:$0xff] %vm728_vm10, %v1560_v16 }
 0x329   : > { %v1361_v17 = vpop.f32.mrf.mxu1 }
 0x32a   : > { %1376 = vst.msk [vmem:[%s278_s11 + $0x30] sm:$0xff] %vm728_vm10, %v1361_v17 }
 0x32b PF: > { %s17_s24 = sadd.s32 1, %s1585_s24  }
 0x32c   : > { %p14_p5 = scmp.ge.s32.totalorder %s17_s24, 4  }
 0x32e   :  { %16 = sbr.rel (!%p14_p5) target bundleno = 1 (0x1), region = 82 }

</bundles_post_ra>
